<compile_context>
chip_gen: v6e
topology: v6e:2x2x1
jax: 0.10.0
libtpu: 0.0.40
codegen_flags: <defaults>
</compile_context>

<pallas_src>
import functools

import jax
import jax.numpy as jnp
from jax.experimental import pallas as pl
from jax.experimental.pallas import tpu as pltpu


# ----------------------------- shared helpers ------------------------------


def _layer_norm(x, gamma, beta, eps=1e-12):
    """f32 LayerNorm over the last axis (used in-kernel and for the embedding LN)."""
    mu = jnp.mean(x, axis=-1, keepdims=True)
    var = jnp.mean((x - mu) ** 2, axis=-1, keepdims=True)
    return (x - mu) * jax.lax.rsqrt(var + eps) * gamma + beta


def _vmem_limit_bytes(requested):
    """Generation-aware scoped-VMEM cap (v5e/v6e: up to ~100 MiB; v7x: <= 48 MiB)."""
    cap = 48 << 20
    try:
        info = pltpu.get_tpu_info()
        phys = getattr(info, "vmem_capacity_bytes", None) or getattr(
            info, "vmem_size_bytes", None)
        if phys:
            cap = int(min(int(phys) * 3 // 4, 100 << 20))
    except Exception:
        pass
    return int(min(max(requested, 16 << 20), cap))


# ----------------------------- Pallas kernel --------------------------------


def encoder_layer_kernel(num_heads, classify, *refs):
    """One BERT encoder layer for a single batch element (grid over batch).

    When `classify` is True the kernel also fuses the CLS-row classifier matmul and
    emits lane-padded logits instead of hidden states.
    """
    if classify:
        (x_ref, neg_ref, wqkv_ref, bqkv_ref, wo_ref, bo_ref, g1_ref, b1_ref,
         wff1_ref, bff1_ref, wff2_ref, bff2_ref, g2_ref, b2_ref,
         wcls_ref, bcls_ref, out_ref) = refs
    else:
        (x_ref, neg_ref, wqkv_ref, bqkv_ref, wo_ref, bo_ref, g1_ref, b1_ref,
         wff1_ref, bff1_ref, wff2_ref, bff2_ref, g2_ref, b2_ref, out_ref) = refs

    x_bf = x_ref[0]                              # [S, H] bf16 (inter-layer activations are bf16)
    S, H = x_bf.shape
    hd = H // num_heads
    x = x_bf.astype(jnp.float32)                 # f32 copy for residual / LayerNorm math

    # Hoisted mask broadcast (JAX does not CSE broadcast_in_dim inside the head loop).
    neg_b = jnp.broadcast_to(neg_ref[0], (S, S))            # [S, S] f32 additive mask

    # Fused QKV projection (Wq/bq pre-scaled by 1/sqrt(hd) at prep time); single bf16 cast.
    qkv = (jnp.dot(x_bf, wqkv_ref[...], preferred_element_type=jnp.float32)
           + bqkv_ref[...]).astype(jnp.bfloat16)             # [S, 3H] bf16
    q = qkv[:, 0 * H:1 * H]
    k = qkv[:, 1 * H:2 * H]
    v = qkv[:, 2 * H:3 * H]

    # Per-head attention. Contexts are kept in bf16 and concatenated once (lane-dense), so there
    # is no f32 scratch slab and no masked sub-128-lane stores. Score tensors have sequential
    # live ranges (only the [S, hd] bf16 contexts survive the loop body).
    ctx_heads = []
    for h in range(num_heads):                   # static unroll over heads
        sl = slice(h * hd, (h + 1) * hd)
        qh, kh, vh = q[:, sl], k[:, sl], v[:, sl]
        # scores = q @ k^T  (contract last dim of both; no explicit transpose materialized)
        scores = jax.lax.dot_general(qh, kh, (((1,), (1,)), ((), ())),
                                     preferred_element_type=jnp.float32)   # [S, S] f32
        scores = scores + neg_b
        m = jnp.max(scores, axis=-1, keepdims=True)
        e = jnp.exp(scores - m)
        p = e * pl.reciprocal(jnp.sum(e, axis=-1, keepdims=True), approx=True)
        ctx_heads.append(
            jnp.dot(p.astype(jnp.bfloat16), vh,
                    preferred_element_type=jnp.float32).astype(jnp.bfloat16))
    ctx = jnp.concatenate(ctx_heads, axis=-1)                 # [S, H] bf16, lane-dense

    attn_out = jnp.dot(ctx, wo_ref[...],
                       preferred_element_type=jnp.float32) + bo_ref[...]
    x1 = _layer_norm(x + attn_out, g1_ref[...], b1_ref[...])               # f32

    hidden = jnp.dot(x1.astype(jnp.bfloat16), wff1_ref[...],
                     preferred_element_type=jnp.float32) + bff1_ref[...]
    hidden = jax.nn.gelu(hidden)                                           # f32 (tanh approx)
    ffn = jnp.dot(hidden.astype(jnp.bfloat16), wff2_ref[...],
                  preferred_element_type=jnp.float32) + bff2_ref[...]
    x2 = _layer_norm(x1 + ffn, g2_ref[...], b2_ref[...])                   # f32

    if classify:
        # Fused classifier epilogue on the CLS row (dropout p=0.1 is identity at inference).
        cls = x2[0:1, :].astype(jnp.bfloat16)                              # [1, H]
        logits = jnp.dot(cls, wcls_ref[...],
                         preferred_element_type=jnp.float32) + bcls_ref[...]   # [1, Cp]
        out_ref[0] = logits
    else:
        out_ref[0] = x2.astype(jnp.bfloat16)


# ------------------------------ wrapper --------------------------------------


def encoder_layer(x, neg3, lp, num_heads, classifier=None):
    """One encoder layer as a pallas_call. If `classifier=(w_cls_pad, b_cls_pad)` is given,
    the CLS-row classifier is fused in and lane-padded logits [B, 1, Cp] are returned."""
    B, S, H = x.shape
    F = lp["w_ff1"].shape[1]
    classify = classifier is not None

    def wspec(shape):
        # Constant-index weights: single-buffered (same block every grid step).
        n = len(shape)
        return pl.BlockSpec(shape, lambda b, n=n: (0,) * n,
                            pipeline_mode=pl.Buffered(1))

    in_specs = [
        pl.BlockSpec((1, S, H), lambda b: (b, 0, 0)),   # x, one batch element per grid step
        pl.BlockSpec((1, 1, S), lambda b: (b, 0, 0)),   # precomputed additive mask
        wspec((H, 3 * H)), wspec((1, 3 * H)),           # fused Wqkv, bqkv
        wspec((H, H)), wspec((1, H)),                   # Wo, bo
        wspec((1, H)), wspec((1, H)),                   # LN1 gamma, beta
        wspec((H, F)), wspec((1, F)),                   # FFN W1, b1
        wspec((F, H)), wspec((1, H)),                   # FFN W2, b2
        wspec((1, H)), wspec((1, H)),                   # LN2 gamma, beta
    ]
    args = [x, neg3,
            lp["wqkv"], lp["bqkv"],
            lp["wo"], lp["bo"], lp["ln1_g"], lp["ln1_b"],
            lp["w_ff1"], lp["b_ff1"], lp["w_ff2"], lp["b_ff2"],
            lp["ln2_g"], lp["ln2_b"]]

    if classify:
        w_cls_pad, b_cls_pad = classifier
        Cp = w_cls_pad.shape[1]
        in_specs += [wspec((H, Cp)), wspec((1, Cp))]
        args += [w_cls_pad, b_cls_pad]
        out_shape = jax.ShapeDtypeStruct((B, 1, Cp), jnp.float32)
        out_specs = pl.BlockSpec((1, 1, Cp), lambda b: (b, 0, 0))
    else:
        out_shape = jax.ShapeDtypeStruct((B, S, H), jnp.bfloat16)
        out_specs = pl.BlockSpec((1, S, H), lambda b: (b, 0, 0))

    # Scoped-VMEM budget: single-buffered bf16 weights + f32 biases/LN, double-buffered bf16
    # activation blocks, plus rough in-kernel temporaries and headroom; clamped by a
    # generation-aware cap (v5e/v6e up to ~100 MiB, v7x <= 48 MiB).
    weight_bytes = (H * 3 * H + H * H + 2 * H * F) * 2 + (3 * H + 6 * H + F) * 4
    if classify:
        Cp = classifier[0].shape[1]
        weight_bytes += H * Cp * 2 + Cp * 4
    act_bytes = 2 * (2 * S * H * 2 + S * 4)                       # x/out bf16 + mask f32, 2-deep
    temp_bytes = S * 3 * H * 6 + S * S * 4 + S * F * 6 + 4 * S * H * 4
    vmem_limit = _vmem_limit_bytes(weight_bytes + act_bytes + temp_bytes + (4 << 20))

    return pl.pallas_call(
        functools.partial(encoder_layer_kernel, num_heads, classify),
        out_shape=out_shape,
        grid=(B,),
        in_specs=in_specs,
        out_specs=out_specs,
        compiler_params=pltpu.CompilerParams(
            dimension_semantics=("parallel",),
            vmem_limit_bytes=vmem_limit),
    )(*args)


def sentiment_classifier_forward(params, input_ids, attention_mask, *,
                                 num_heads, num_classes):
    """Mirrors SentimentClassifier.forward: bert(...)[0][:, 0, :] -> dropout -> linear."""
    B, S = input_ids.shape
    # glue: embedding gather + token-type/position add + embedding LayerNorm (plain JAX)
    x = (params["word_emb"][input_ids]
         + params["pos_emb"][None, :S, :]
         + params["type_emb"][0][None, None, :])
    x = _layer_norm(x, params["emb_ln_g"], params["emb_ln_b"]).astype(jnp.bfloat16)

    # Precompute additive mask once: (1 - mask) * -1e9, [B, 1, S]
    neg3 = ((1.0 - attention_mask.astype(jnp.float32)) * (-1e9))[:, None, :]

    n_layers = len(params["layers"])
    logits_padded = None
    for i, lp in enumerate(params["layers"]):
        if i + 1 < n_layers:
            x = encoder_layer(x, neg3, lp, num_heads)
        else:
            # Last layer: classifier fused into the epilogue (CLS row, lane-padded logits).
            logits_padded = encoder_layer(
                x, neg3, lp, num_heads,
                classifier=(params["w_cls_pad"], params["b_cls_pad"]))
    return logits_padded[:, 0, :num_classes]


# ------------------------------ params --------------------------------------


def init_params(key, *, vocab, max_pos, hidden, ffn, num_layers, num_classes):
    """PyTorch-style f32 parameters (weights already transposed to [in, out])."""
    ks = iter(jax.random.split(key, 8 + 12 * num_layers))

    def nrm(shape, scale=0.02):
        return (scale * jax.random.normal(next(ks), shape)).astype(jnp.float32)

    params = {
        "word_emb": nrm((vocab, hidden)),
        "pos_emb": nrm((max_pos, hidden)),
        "type_emb": nrm((2, hidden)),
        "emb_ln_g": jnp.ones((hidden,), jnp.float32),
        "emb_ln_b": jnp.zeros((hidden,), jnp.float32),
        "w_cls": nrm((hidden, num_classes)),
        "b_cls": jnp.zeros((1, num_classes), jnp.float32),
        "layers": [],
    }
    for _ in range(num_layers):
        params["layers"].append({
            "wq": nrm((hidden, hidden)), "bq": jnp.zeros((1, hidden), jnp.float32),
            "wk": nrm((hidden, hidden)), "bk": jnp.zeros((1, hidden), jnp.float32),
            "wv": nrm((hidden, hidden)), "bv": jnp.zeros((1, hidden), jnp.float32),
            "wo": nrm((hidden, hidden)), "bo": jnp.zeros((1, hidden), jnp.float32),
            "ln1_g": jnp.ones((1, hidden), jnp.float32),
            "ln1_b": jnp.zeros((1, hidden), jnp.float32),
            "w_ff1": nrm((hidden, ffn)), "b_ff1": jnp.zeros((1, ffn), jnp.float32),
            "w_ff2": nrm((ffn, hidden)), "b_ff2": jnp.zeros((1, hidden), jnp.float32),
            "ln2_g": jnp.ones((1, hidden), jnp.float32),
            "ln2_b": jnp.zeros((1, hidden), jnp.float32),
        })
    return params


def prepare_inference_params(params, *, num_heads):
    """One-time prep: fuse QKV, fold 1/sqrt(hd) into Wq/bq, cast matmul weights to bf16,
    pad the classifier weight to a lane-dense [H, 128*k] block. Biases / LN stay f32."""
    H = params["word_emb"].shape[1]
    hd = H // num_heads
    scale = 1.0 / float(hd) ** 0.5

    prepped = {
        "word_emb": params["word_emb"],
        "pos_emb": params["pos_emb"],
        "type_emb": params["type_emb"],
        "emb_ln_g": params["emb_ln_g"],
        "emb_ln_b": params["emb_ln_b"],
        "layers": [],
    }
    for lp in params["layers"]:
        wqkv = jnp.concatenate([lp["wq"] * scale, lp["wk"], lp["wv"]],
                               axis=1).astype(jnp.bfloat16)                     # [H, 3H]
        bqkv = jnp.concatenate([lp["bq"] * scale, lp["bk"], lp["bv"]], axis=1)  # [1, 3H] f32
        prepped["layers"].append({
            "wqkv": wqkv, "bqkv": bqkv,
            "wo": lp["wo"].astype(jnp.bfloat16), "bo": lp["bo"],
            "ln1_g": lp["ln1_g"], "ln1_b": lp["ln1_b"],
            "w_ff1": lp["w_ff1"].astype(jnp.bfloat16), "b_ff1": lp["b_ff1"],
            "w_ff2": lp["w_ff2"].astype(jnp.bfloat16), "b_ff2": lp["b_ff2"],
            "ln2_g": lp["ln2_g"], "ln2_b": lp["ln2_b"],
        })

    C = params["w_cls"].shape[1]
    Cp = ((C + 127) // 128) * 128
    w_cls_pad = jnp.zeros((H, Cp), jnp.bfloat16).at[:, :C].set(
        params["w_cls"].astype(jnp.bfloat16))
    b_cls_pad = jnp.zeros((1, Cp), jnp.float32).at[:, :C].set(params["b_cls"])
    prepped["w_cls_pad"] = w_cls_pad
    prepped["b_cls_pad"] = b_cls_pad
    return prepped


# -------------------------------- main ---------------------------------------


if __name__ == "__main__":
    B, S, H, NUM_HEADS, LAYERS, FFN, VOCAB, NUM_CLASSES = 2, 8, 32, 2, 2, 64, 100, 3

    key = jax.random.PRNGKey(0)
    k_ids, k_params = jax.random.split(key)

    input_ids = jax.random.randint(k_ids, (B, S), 0, VOCAB, dtype=jnp.int32)
    attention_mask = jnp.ones((B, S), jnp.int32).at[1, 6:].set(0)   # batch 1 has 2 pad tokens

    params = init_params(k_params, vocab=VOCAB, max_pos=S, hidden=H,
                         ffn=FFN, num_layers=LAYERS, num_classes=NUM_CLASSES)
    prepped = prepare_inference_params(params, num_heads=NUM_HEADS)

    fwd = jax.jit(functools.partial(sentiment_classifier_forward,
                                    num_heads=NUM_HEADS, num_classes=NUM_CLASSES))
    logits = fwd(prepped, input_ids, attention_mask)
    logits = jax.block_until_ready(logits)
    assert logits.shape == (B, NUM_CLASSES)
    assert bool(jnp.all(jnp.isfinite(logits)))
    print("KERNEL_OK")
</pallas_src>

<mosaic_0001>
module attributes {stable_mosaic.version = 11 : i64} {
  func.func @encoder_layer_kernel(%arg0: i32, %arg1: memref<1x8x32xbf16, #tpu.memory_space<vmem>>, %arg2: memref<1x1x8xf32, #tpu.memory_space<vmem>>, %arg3: memref<32x96xbf16, #tpu.memory_space<vmem>>, %arg4: memref<1x96xf32, #tpu.memory_space<vmem>>, %arg5: memref<32x32xbf16, #tpu.memory_space<vmem>>, %arg6: memref<1x32xf32, #tpu.memory_space<vmem>>, %arg7: memref<1x32xf32, #tpu.memory_space<vmem>>, %arg8: memref<1x32xf32, #tpu.memory_space<vmem>>, %arg9: memref<32x64xbf16, #tpu.memory_space<vmem>>, %arg10: memref<1x64xf32, #tpu.memory_space<vmem>>, %arg11: memref<64x32xbf16, #tpu.memory_space<vmem>>, %arg12: memref<1x32xf32, #tpu.memory_space<vmem>>, %arg13: memref<1x32xf32, #tpu.memory_space<vmem>>, %arg14: memref<1x32xf32, #tpu.memory_space<vmem>>, %arg15: memref<1x8x32xbf16, #tpu.memory_space<vmem>>) attributes {dimension_semantics = [#tpu.dimension_semantics<parallel>], iteration_bounds = array<i64: 2>, scalar_prefetch = 0 : i64, scratch_operands = 0 : i64, tpu.core_type = #tpu.core_type<tc>, window_params = [{transform_indices = @transform_0, window_bounds = array<i64: 1, 8, 32>}, {transform_indices = @transform_1, window_bounds = array<i64: 1, 1, 8>}, {pipeline_mode = #tpu.pipeline_mode<synchronous>, transform_indices = @transform_2, window_bounds = array<i64: 32, 96>}, {pipeline_mode = #tpu.pipeline_mode<synchronous>, transform_indices = @transform_3, window_bounds = array<i64: 1, 96>}, {pipeline_mode = #tpu.pipeline_mode<synchronous>, transform_indices = @transform_4, window_bounds = array<i64: 32, 32>}, {pipeline_mode = #tpu.pipeline_mode<synchronous>, transform_indices = @transform_5, window_bounds = array<i64: 1, 32>}, {pipeline_mode = #tpu.pipeline_mode<synchronous>, transform_indices = @transform_6, window_bounds = array<i64: 1, 32>}, {pipeline_mode = #tpu.pipeline_mode<synchronous>, transform_indices = @transform_7, window_bounds = array<i64: 1, 32>}, {pipeline_mode = #tpu.pipeline_mode<synchronous>, transform_indices = @transform_8, window_bounds = array<i64: 32, 64>}, {pipeline_mode = #tpu.pipeline_mode<synchronous>, transform_indices = @transform_9, window_bounds = array<i64: 1, 64>}, {pipeline_mode = #tpu.pipeline_mode<synchronous>, transform_indices = @transform_10, window_bounds = array<i64: 64, 32>}, {pipeline_mode = #tpu.pipeline_mode<synchronous>, transform_indices = @transform_11, window_bounds = array<i64: 1, 32>}, {pipeline_mode = #tpu.pipeline_mode<synchronous>, transform_indices = @transform_12, window_bounds = array<i64: 1, 32>}, {pipeline_mode = #tpu.pipeline_mode<synchronous>, transform_indices = @transform_13, window_bounds = array<i64: 1, 32>}, {transform_indices = @transform_14, window_bounds = array<i64: 1, 8, 32>}]} {
    %c0 = arith.constant 0 : index
    %c0_0 = arith.constant 0 : index
    %c0_1 = arith.constant 0 : index
    %0 = vector.load %arg1[%c0, %c0_0, %c0_1] : memref<1x8x32xbf16, #tpu.memory_space<vmem>>, vector<1x8x32xbf16>
    %1 = vector.shape_cast %0 : vector<1x8x32xbf16> to vector<8x32xbf16>
    %2 = arith.extf %1 : vector<8x32xbf16> to vector<8x32xf32>
    %c0_2 = arith.constant 0 : index
    %c0_3 = arith.constant 0 : index
    %c0_4 = arith.constant 0 : index
    %3 = vector.load %arg2[%c0_2, %c0_3, %c0_4] : memref<1x1x8xf32, #tpu.memory_space<vmem>>, vector<1x1x8xf32>
    %4 = vector.shape_cast %3 : vector<1x1x8xf32> to vector<1x8xf32>
    %5 = vector.shape_cast %4 : vector<1x8xf32> to vector<1x8xf32>
    %6 = vector.broadcast %5 : vector<1x8xf32> to vector<8x8xf32>
    %c0_5 = arith.constant 0 : index
    %c0_6 = arith.constant 0 : index
    %7 = vector.load %arg3[%c0_5, %c0_6] : memref<32x96xbf16, #tpu.memory_space<vmem>>, vector<32x96xbf16>
    %cst = arith.constant dense<0.000000e+00> : vector<8x96xf32>
    %8 = tpu.matmul %1, %7, %cst {dimension_numbers = #tpu.dot_dimension_numbers<[1], [0], [0], [1], [0, 0, 1, 1], [], []>} : vector<8x32xbf16>, vector<32x96xbf16>, vector<8x96xf32> -> vector<8x96xf32>
    %c0_7 = arith.constant 0 : index
    %c0_8 = arith.constant 0 : index
    %9 = vector.load %arg4[%c0_7, %c0_8] : memref<1x96xf32, #tpu.memory_space<vmem>>, vector<1x96xf32>
    %10 = vector.broadcast %9 : vector<1x96xf32> to vector<8x96xf32>
    %11 = arith.addf %8, %10 : vector<8x96xf32>
    %12 = arith.truncf %11 : vector<8x96xf32> to vector<8x96xbf16>
    %13 = vector.extract_strided_slice %12 {offsets = [0, 0], sizes = [8, 32], strides = [1, 1]} : vector<8x96xbf16> to vector<8x32xbf16>
    %14 = vector.extract_strided_slice %12 {offsets = [0, 32], sizes = [8, 32], strides = [1, 1]} : vector<8x96xbf16> to vector<8x32xbf16>
    %15 = vector.extract_strided_slice %12 {offsets = [0, 64], sizes = [8, 32], strides = [1, 1]} : vector<8x96xbf16> to vector<8x32xbf16>
    %16 = vector.extract_strided_slice %13 {offsets = [0, 0], sizes = [8, 16], strides = [1, 1]} : vector<8x32xbf16> to vector<8x16xbf16>
    %17 = vector.extract_strided_slice %14 {offsets = [0, 0], sizes = [8, 16], strides = [1, 1]} : vector<8x32xbf16> to vector<8x16xbf16>
    %18 = vector.extract_strided_slice %15 {offsets = [0, 0], sizes = [8, 16], strides = [1, 1]} : vector<8x32xbf16> to vector<8x16xbf16>
    %cst_9 = arith.constant dense<0.000000e+00> : vector<8x8xf32>
    %19 = tpu.matmul %16, %17, %cst_9 {dimension_numbers = #tpu.dot_dimension_numbers<[1], [1], [0], [0], [0, 0, 1, 0], [], []>} : vector<8x16xbf16>, vector<8x16xbf16>, vector<8x8xf32> -> vector<8x8xf32>
    %20 = arith.addf %19, %6 : vector<8x8xf32>
    %cst_10 = arith.constant dense<0xFF800000> : vector<8xf32>
    %21 = vector.multi_reduction <maximumf>, %20, %cst_10 [1] : vector<8x8xf32> to vector<8xf32>
    %22 = vector.shape_cast %21 : vector<8xf32> to vector<8x1xf32>
    %23 = vector.broadcast %22 : vector<8x1xf32> to vector<8x8xf32>
    %24 = arith.subf %20, %23 : vector<8x8xf32>
    %25 = math.exp %24 : vector<8x8xf32>
    %cst_11 = arith.constant dense<0.000000e+00> : vector<8xf32>
    %26 = vector.multi_reduction <add>, %25, %cst_11 [1] : vector<8x8xf32> to vector<8xf32>
    %27 = vector.shape_cast %26 : vector<8xf32> to vector<8x1xf32>
    %28 = tpu.reciprocal %27 {approx = true} : vector<8x1xf32> -> vector<8x1xf32>
    %29 = vector.broadcast %28 : vector<8x1xf32> to vector<8x8xf32>
    %30 = arith.mulf %25, %29 : vector<8x8xf32>
    %31 = arith.truncf %30 : vector<8x8xf32> to vector<8x8xbf16>
    %cst_12 = arith.constant dense<0.000000e+00> : vector<8x16xf32>
    %32 = tpu.matmul %31, %18, %cst_12 {dimension_numbers = #tpu.dot_dimension_numbers<[1], [0], [0], [1], [0, 0, 1, 1], [], []>} : vector<8x8xbf16>, vector<8x16xbf16>, vector<8x16xf32> -> vector<8x16xf32>
    %33 = arith.truncf %32 : vector<8x16xf32> to vector<8x16xbf16>
    %34 = vector.extract_strided_slice %13 {offsets = [0, 16], sizes = [8, 16], strides = [1, 1]} : vector<8x32xbf16> to vector<8x16xbf16>
    %35 = vector.extract_strided_slice %14 {offsets = [0, 16], sizes = [8, 16], strides = [1, 1]} : vector<8x32xbf16> to vector<8x16xbf16>
    %36 = vector.extract_strided_slice %15 {offsets = [0, 16], sizes = [8, 16], strides = [1, 1]} : vector<8x32xbf16> to vector<8x16xbf16>
    %cst_13 = arith.constant dense<0.000000e+00> : vector<8x8xf32>
    %37 = tpu.matmul %34, %35, %cst_13 {dimension_numbers = #tpu.dot_dimension_numbers<[1], [1], [0], [0], [0, 0, 1, 0], [], []>} : vector<8x16xbf16>, vector<8x16xbf16>, vector<8x8xf32> -> vector<8x8xf32>
    %38 = arith.addf %37, %6 : vector<8x8xf32>
    %cst_14 = arith.constant dense<0xFF800000> : vector<8xf32>
    %39 = vector.multi_reduction <maximumf>, %38, %cst_14 [1] : vector<8x8xf32> to vector<8xf32>
    %40 = vector.shape_cast %39 : vector<8xf32> to vector<8x1xf32>
    %41 = vector.broadcast %40 : vector<8x1xf32> to vector<8x8xf32>
    %42 = arith.subf %38, %41 : vector<8x8xf32>
    %43 = math.exp %42 : vector<8x8xf32>
    %cst_15 = arith.constant dense<0.000000e+00> : vector<8xf32>
    %44 = vector.multi_reduction <add>, %43, %cst_15 [1] : vector<8x8xf32> to vector<8xf32>
    %45 = vector.shape_cast %44 : vector<8xf32> to vector<8x1xf32>
    %46 = tpu.reciprocal %45 {approx = true} : vector<8x1xf32> -> vector<8x1xf32>
    %47 = vector.broadcast %46 : vector<8x1xf32> to vector<8x8xf32>
    %48 = arith.mulf %43, %47 : vector<8x8xf32>
    %49 = arith.truncf %48 : vector<8x8xf32> to vector<8x8xbf16>
    %cst_16 = arith.constant dense<0.000000e+00> : vector<8x16xf32>
    %50 = tpu.matmul %49, %36, %cst_16 {dimension_numbers = #tpu.dot_dimension_numbers<[1], [0], [0], [1], [0, 0, 1, 1], [], []>} : vector<8x8xbf16>, vector<8x16xbf16>, vector<8x16xf32> -> vector<8x16xf32>
    %51 = arith.truncf %50 : vector<8x16xf32> to vector<8x16xbf16>
    %52 = tpu.concatenate %33, %51 in 1 : vector<8x16xbf16>, vector<8x16xbf16> -> vector<8x32xbf16>
    %c0_17 = arith.constant 0 : index
    %c0_18 = arith.constant 0 : index
    %53 = vector.load %arg5[%c0_17, %c0_18] : memref<32x32xbf16, #tpu.memory_space<vmem>>, vector<32x32xbf16>
    %cst_19 = arith.constant dense<0.000000e+00> : vector<8x32xf32>
    %54 = tpu.matmul %52, %53, %cst_19 {dimension_numbers = #tpu.dot_dimension_numbers<[1], [0], [0], [1], [0, 0, 1, 1], [], []>} : vector<8x32xbf16>, vector<32x32xbf16>, vector<8x32xf32> -> vector<8x32xf32>
    %c0_20 = arith.constant 0 : index
    %c0_21 = arith.constant 0 : index
    %55 = vector.load %arg6[%c0_20, %c0_21] : memref<1x32xf32, #tpu.memory_space<vmem>>, vector<1x32xf32>
    %56 = vector.broadcast %55 : vector<1x32xf32> to vector<8x32xf32>
    %57 = arith.addf %54, %56 : vector<8x32xf32>
    %58 = arith.addf %2, %57 : vector<8x32xf32>
    %c0_22 = arith.constant 0 : index
    %c0_23 = arith.constant 0 : index
    %59 = vector.load %arg7[%c0_22, %c0_23] : memref<1x32xf32, #tpu.memory_space<vmem>>, vector<1x32xf32>
    %c0_24 = arith.constant 0 : index
    %c0_25 = arith.constant 0 : index
    %60 = vector.load %arg8[%c0_24, %c0_25] : memref<1x32xf32, #tpu.memory_space<vmem>>, vector<1x32xf32>
    %cst_26 = arith.constant dense<0.000000e+00> : vector<8xf32>
    %61 = vector.multi_reduction <add>, %58, %cst_26 [1] : vector<8x32xf32> to vector<8xf32>
    %62 = vector.shape_cast %61 : vector<8xf32> to vector<8x1xf32>
    %cst_27 = arith.constant 3.200000e+01 : f32
    %63 = vector.broadcast %cst_27 : f32 to vector<8x1xf32>
    %64 = arith.divf %62, %63 : vector<8x1xf32>
    %65 = vector.broadcast %64 : vector<8x1xf32> to vector<8x32xf32>
    %66 = arith.subf %58, %65 : vector<8x32xf32>
    %67 = arith.mulf %66, %66 : vector<8x32xf32>
    %cst_28 = arith.constant dense<0.000000e+00> : vector<8xf32>
    %68 = vector.multi_reduction <add>, %67, %cst_28 [1] : vector<8x32xf32> to vector<8xf32>
    %69 = vector.shape_cast %68 : vector<8xf32> to vector<8x1xf32>
    %cst_29 = arith.constant 3.200000e+01 : f32
    %70 = vector.broadcast %cst_29 : f32 to vector<8x1xf32>
    %71 = arith.divf %69, %70 : vector<8x1xf32>
    %72 = vector.broadcast %64 : vector<8x1xf32> to vector<8x32xf32>
    %73 = arith.subf %58, %72 : vector<8x32xf32>
    %cst_30 = arith.constant 9.99999996E-13 : f32
    %74 = vector.broadcast %cst_30 : f32 to vector<8x1xf32>
    %75 = arith.addf %71, %74 : vector<8x1xf32>
    %76 = math.rsqrt %75 : vector<8x1xf32>
    %77 = vector.broadcast %76 : vector<8x1xf32> to vector<8x32xf32>
    %78 = arith.mulf %73, %77 : vector<8x32xf32>
    %79 = vector.broadcast %59 : vector<1x32xf32> to vector<8x32xf32>
    %80 = arith.mulf %78, %79 : vector<8x32xf32>
    %81 = vector.broadcast %60 : vector<1x32xf32> to vector<8x32xf32>
    %82 = arith.addf %80, %81 : vector<8x32xf32>
    %83 = arith.truncf %82 : vector<8x32xf32> to vector<8x32xbf16>
    %c0_31 = arith.constant 0 : index
    %c0_32 = arith.constant 0 : index
    %84 = vector.load %arg9[%c0_31, %c0_32] : memref<32x64xbf16, #tpu.memory_space<vmem>>, vector<32x64xbf16>
    %cst_33 = arith.constant dense<0.000000e+00> : vector<8x64xf32>
    %85 = tpu.matmul %83, %84, %cst_33 {dimension_numbers = #tpu.dot_dimension_numbers<[1], [0], [0], [1], [0, 0, 1, 1], [], []>} : vector<8x32xbf16>, vector<32x64xbf16>, vector<8x64xf32> -> vector<8x64xf32>
    %c0_34 = arith.constant 0 : index
    %c0_35 = arith.constant 0 : index
    %86 = vector.load %arg10[%c0_34, %c0_35] : memref<1x64xf32, #tpu.memory_space<vmem>>, vector<1x64xf32>
    %87 = vector.broadcast %86 : vector<1x64xf32> to vector<8x64xf32>
    %88 = arith.addf %85, %87 : vector<8x64xf32>
    %89 = arith.mulf %88, %88 : vector<8x64xf32>
    %90 = arith.mulf %88, %89 : vector<8x64xf32>
    %cst_36 = arith.constant 4.471500e-02 : f32
    %91 = vector.broadcast %cst_36 : f32 to vector<8x64xf32>
    %92 = arith.mulf %91, %90 : vector<8x64xf32>
    %93 = arith.addf %88, %92 : vector<8x64xf32>
    %cst_37 = arith.constant 0.797884583 : f32
    %94 = vector.broadcast %cst_37 : f32 to vector<8x64xf32>
    %95 = arith.mulf %94, %93 : vector<8x64xf32>
    %96 = math.tanh %95 : vector<8x64xf32>
    %cst_38 = arith.constant 1.000000e+00 : f32
    %97 = vector.broadcast %cst_38 : f32 to vector<8x64xf32>
    %98 = arith.addf %97, %96 : vector<8x64xf32>
    %cst_39 = arith.constant 5.000000e-01 : f32
    %99 = vector.broadcast %cst_39 : f32 to vector<8x64xf32>
    %100 = arith.mulf %99, %98 : vector<8x64xf32>
    %101 = arith.mulf %88, %100 : vector<8x64xf32>
    %102 = arith.truncf %101 : vector<8x64xf32> to vector<8x64xbf16>
    %c0_40 = arith.constant 0 : index
    %c0_41 = arith.constant 0 : index
    %103 = vector.load %arg11[%c0_40, %c0_41] : memref<64x32xbf16, #tpu.memory_space<vmem>>, vector<64x32xbf16>
    %cst_42 = arith.constant dense<0.000000e+00> : vector<8x32xf32>
    %104 = tpu.matmul %102, %103, %cst_42 {dimension_numbers = #tpu.dot_dimension_numbers<[1], [0], [0], [1], [0, 0, 1, 1], [], []>} : vector<8x64xbf16>, vector<64x32xbf16>, vector<8x32xf32> -> vector<8x32xf32>
    %c0_43 = arith.constant 0 : index
    %c0_44 = arith.constant 0 : index
    %105 = vector.load %arg12[%c0_43, %c0_44] : memref<1x32xf32, #tpu.memory_space<vmem>>, vector<1x32xf32>
    %106 = vector.broadcast %105 : vector<1x32xf32> to vector<8x32xf32>
    %107 = arith.addf %104, %106 : vector<8x32xf32>
    %108 = arith.addf %82, %107 : vector<8x32xf32>
    %c0_45 = arith.constant 0 : index
    %c0_46 = arith.constant 0 : index
    %109 = vector.load %arg13[%c0_45, %c0_46] : memref<1x32xf32, #tpu.memory_space<vmem>>, vector<1x32xf32>
    %c0_47 = arith.constant 0 : index
    %c0_48 = arith.constant 0 : index
    %110 = vector.load %arg14[%c0_47, %c0_48] : memref<1x32xf32, #tpu.memory_space<vmem>>, vector<1x32xf32>
    %cst_49 = arith.constant dense<0.000000e+00> : vector<8xf32>
    %111 = vector.multi_reduction <add>, %108, %cst_49 [1] : vector<8x32xf32> to vector<8xf32>
    %112 = vector.shape_cast %111 : vector<8xf32> to vector<8x1xf32>
    %cst_50 = arith.constant 3.200000e+01 : f32
    %113 = vector.broadcast %cst_50 : f32 to vector<8x1xf32>
    %114 = arith.divf %112, %113 : vector<8x1xf32>
    %115 = vector.broadcast %114 : vector<8x1xf32> to vector<8x32xf32>
    %116 = arith.subf %108, %115 : vector<8x32xf32>
    %117 = arith.mulf %116, %116 : vector<8x32xf32>
    %cst_51 = arith.constant dense<0.000000e+00> : vector<8xf32>
    %118 = vector.multi_reduction <add>, %117, %cst_51 [1] : vector<8x32xf32> to vector<8xf32>
    %119 = vector.shape_cast %118 : vector<8xf32> to vector<8x1xf32>
    %cst_52 = arith.constant 3.200000e+01 : f32
    %120 = vector.broadcast %cst_52 : f32 to vector<8x1xf32>
    %121 = arith.divf %119, %120 : vector<8x1xf32>
    %122 = vector.broadcast %114 : vector<8x1xf32> to vector<8x32xf32>
    %123 = arith.subf %108, %122 : vector<8x32xf32>
    %cst_53 = arith.constant 9.99999996E-13 : f32
    %124 = vector.broadcast %cst_53 : f32 to vector<8x1xf32>
    %125 = arith.addf %121, %124 : vector<8x1xf32>
    %126 = math.rsqrt %125 : vector<8x1xf32>
    %127 = vector.broadcast %126 : vector<8x1xf32> to vector<8x32xf32>
    %128 = arith.mulf %123, %127 : vector<8x32xf32>
    %129 = vector.broadcast %109 : vector<1x32xf32> to vector<8x32xf32>
    %130 = arith.mulf %128, %129 : vector<8x32xf32>
    %131 = vector.broadcast %110 : vector<1x32xf32> to vector<8x32xf32>
    %132 = arith.addf %130, %131 : vector<8x32xf32>
    %133 = arith.truncf %132 : vector<8x32xf32> to vector<8x32xbf16>
    %c0_54 = arith.constant 0 : index
    %c0_55 = arith.constant 0 : index
    %c0_56 = arith.constant 0 : index
    %134 = vector.load %arg15[%c0_54, %c0_55, %c0_56] : memref<1x8x32xbf16, #tpu.memory_space<vmem>>, vector<1x8x32xbf16>
    %135 = vector.shape_cast %134 : vector<1x8x32xbf16> to vector<8x32xbf16>
    %136 = vector.shape_cast %133 : vector<8x32xbf16> to vector<1x8x32xbf16>
    tpu.vector_store %arg15[%c0_54, %c0_55, %c0_56], %136 {strides = array<i32>} : memref<1x8x32xbf16, #tpu.memory_space<vmem>>, vector<1x8x32xbf16>,
    return
  }
  func.func @transform_0(%arg0: i32) -> (i32, i32, i32) {
    %c0_i32 = arith.constant 0 : i32
    %c0_i32_0 = arith.constant 0 : i32
    %c0_i32_1 = arith.constant 0 : i32
    return %arg0, %c0_i32, %c0_i32_0 : i32, i32, i32
  }
  func.func @transform_1(%arg0: i32) -> (i32, i32, i32) {
    %c0_i32 = arith.constant 0 : i32
    %c0_i32_0 = arith.constant 0 : i32
    %c0_i32_1 = arith.constant 0 : i32
    return %arg0, %c0_i32, %c0_i32_0 : i32, i32, i32
  }
  func.func @transform_2(%arg0: i32) -> (i32, i32) {
    %c0_i32 = arith.constant 0 : i32
    %c0_i32_0 = arith.constant 0 : i32
    %c0_i32_1 = arith.constant 0 : i32
    return %c0_i32, %c0_i32_0 : i32, i32
  }
  func.func @transform_3(%arg0: i32) -> (i32, i32) {
    %c0_i32 = arith.constant 0 : i32
    %c0_i32_0 = arith.constant 0 : i32
    %c0_i32_1 = arith.constant 0 : i32
    return %c0_i32, %c0_i32_0 : i32, i32
  }
  func.func @transform_4(%arg0: i32) -> (i32, i32) {
    %c0_i32 = arith.constant 0 : i32
    %c0_i32_0 = arith.constant 0 : i32
    %c0_i32_1 = arith.constant 0 : i32
    return %c0_i32, %c0_i32_0 : i32, i32
  }
  func.func @transform_5(%arg0: i32) -> (i32, i32) {
    %c0_i32 = arith.constant 0 : i32
    %c0_i32_0 = arith.constant 0 : i32
    %c0_i32_1 = arith.constant 0 : i32
    return %c0_i32, %c0_i32_0 : i32, i32
  }
  func.func @transform_6(%arg0: i32) -> (i32, i32) {
    %c0_i32 = arith.constant 0 : i32
    %c0_i32_0 = arith.constant 0 : i32
    %c0_i32_1 = arith.constant 0 : i32
    return %c0_i32, %c0_i32_0 : i32, i32
  }
  func.func @transform_7(%arg0: i32) -> (i32, i32) {
    %c0_i32 = arith.constant 0 : i32
    %c0_i32_0 = arith.constant 0 : i32
    %c0_i32_1 = arith.constant 0 : i32
    return %c0_i32, %c0_i32_0 : i32, i32
  }
  func.func @transform_8(%arg0: i32) -> (i32, i32) {
    %c0_i32 = arith.constant 0 : i32
    %c0_i32_0 = arith.constant 0 : i32
    %c0_i32_1 = arith.constant 0 : i32
    return %c0_i32, %c0_i32_0 : i32, i32
  }
  func.func @transform_9(%arg0: i32) -> (i32, i32) {
    %c0_i32 = arith.constant 0 : i32
    %c0_i32_0 = arith.constant 0 : i32
    %c0_i32_1 = arith.constant 0 : i32
    return %c0_i32, %c0_i32_0 : i32, i32
  }
  func.func @transform_10(%arg0: i32) -> (i32, i32) {
    %c0_i32 = arith.constant 0 : i32
    %c0_i32_0 = arith.constant 0 : i32
    %c0_i32_1 = arith.constant 0 : i32
    return %c0_i32, %c0_i32_0 : i32, i32
  }
  func.func @transform_11(%arg0: i32) -> (i32, i32) {
    %c0_i32 = arith.constant 0 : i32
    %c0_i32_0 = arith.constant 0 : i32
    %c0_i32_1 = arith.constant 0 : i32
    return %c0_i32, %c0_i32_0 : i32, i32
  }
  func.func @transform_12(%arg0: i32) -> (i32, i32) {
    %c0_i32 = arith.constant 0 : i32
    %c0_i32_0 = arith.constant 0 : i32
    %c0_i32_1 = arith.constant 0 : i32
    return %c0_i32, %c0_i32_0 : i32, i32
  }
  func.func @transform_13(%arg0: i32) -> (i32, i32) {
    %c0_i32 = arith.constant 0 : i32
    %c0_i32_0 = arith.constant 0 : i32
    %c0_i32_1 = arith.constant 0 : i32
    return %c0_i32, %c0_i32_0 : i32, i32
  }
  func.func @transform_14(%arg0: i32) -> (i32, i32, i32) {
    %c0_i32 = arith.constant 0 : i32
    %c0_i32_0 = arith.constant 0 : i32
    %c0_i32_1 = arith.constant 0 : i32
    return %arg0, %c0_i32, %c0_i32_0 : i32, i32, i32
  }
}

module attributes {stable_mosaic.version = 11 : i64} {
  func.func @encoder_layer_kernel(%arg0: i32, %arg1: memref<1x8x32xbf16, #tpu.memory_space<vmem>>, %arg2: memref<1x1x8xf32, #tpu.memory_space<vmem>>, %arg3: memref<32x96xbf16, #tpu.memory_space<vmem>>, %arg4: memref<1x96xf32, #tpu.memory_space<vmem>>, %arg5: memref<32x32xbf16, #tpu.memory_space<vmem>>, %arg6: memref<1x32xf32, #tpu.memory_space<vmem>>, %arg7: memref<1x32xf32, #tpu.memory_space<vmem>>, %arg8: memref<1x32xf32, #tpu.memory_space<vmem>>, %arg9: memref<32x64xbf16, #tpu.memory_space<vmem>>, %arg10: memref<1x64xf32, #tpu.memory_space<vmem>>, %arg11: memref<64x32xbf16, #tpu.memory_space<vmem>>, %arg12: memref<1x32xf32, #tpu.memory_space<vmem>>, %arg13: memref<1x32xf32, #tpu.memory_space<vmem>>, %arg14: memref<1x32xf32, #tpu.memory_space<vmem>>, %arg15: memref<32x128xbf16, #tpu.memory_space<vmem>>, %arg16: memref<1x128xf32, #tpu.memory_space<vmem>>, %arg17: memref<1x1x128xf32, #tpu.memory_space<vmem>>) attributes {dimension_semantics = [#tpu.dimension_semantics<parallel>], iteration_bounds = array<i64: 2>, scalar_prefetch = 0 : i64, scratch_operands = 0 : i64, tpu.core_type = #tpu.core_type<tc>, window_params = [{transform_indices = @transform_0, window_bounds = array<i64: 1, 8, 32>}, {transform_indices = @transform_1, window_bounds = array<i64: 1, 1, 8>}, {pipeline_mode = #tpu.pipeline_mode<synchronous>, transform_indices = @transform_2, window_bounds = array<i64: 32, 96>}, {pipeline_mode = #tpu.pipeline_mode<synchronous>, transform_indices = @transform_3, window_bounds = array<i64: 1, 96>}, {pipeline_mode = #tpu.pipeline_mode<synchronous>, transform_indices = @transform_4, window_bounds = array<i64: 32, 32>}, {pipeline_mode = #tpu.pipeline_mode<synchronous>, transform_indices = @transform_5, window_bounds = array<i64: 1, 32>}, {pipeline_mode = #tpu.pipeline_mode<synchronous>, transform_indices = @transform_6, window_bounds = array<i64: 1, 32>}, {pipeline_mode = #tpu.pipeline_mode<synchronous>, transform_indices = @transform_7, window_bounds = array<i64: 1, 32>}, {pipeline_mode = #tpu.pipeline_mode<synchronous>, transform_indices = @transform_8, window_bounds = array<i64: 32, 64>}, {pipeline_mode = #tpu.pipeline_mode<synchronous>, transform_indices = @transform_9, window_bounds = array<i64: 1, 64>}, {pipeline_mode = #tpu.pipeline_mode<synchronous>, transform_indices = @transform_10, window_bounds = array<i64: 64, 32>}, {pipeline_mode = #tpu.pipeline_mode<synchronous>, transform_indices = @transform_11, window_bounds = array<i64: 1, 32>}, {pipeline_mode = #tpu.pipeline_mode<synchronous>, transform_indices = @transform_12, window_bounds = array<i64: 1, 32>}, {pipeline_mode = #tpu.pipeline_mode<synchronous>, transform_indices = @transform_13, window_bounds = array<i64: 1, 32>}, {pipeline_mode = #tpu.pipeline_mode<synchronous>, transform_indices = @transform_14, window_bounds = array<i64: 32, 128>}, {pipeline_mode = #tpu.pipeline_mode<synchronous>, transform_indices = @transform_15, window_bounds = array<i64: 1, 128>}, {transform_indices = @transform_16, window_bounds = array<i64: 1, 1, 128>}]} {
    %c0 = arith.constant 0 : index
    %c0_0 = arith.constant 0 : index
    %c0_1 = arith.constant 0 : index
    %0 = vector.load %arg1[%c0, %c0_0, %c0_1] : memref<1x8x32xbf16, #tpu.memory_space<vmem>>, vector<1x8x32xbf16>
    %1 = vector.shape_cast %0 : vector<1x8x32xbf16> to vector<8x32xbf16>
    %2 = arith.extf %1 : vector<8x32xbf16> to vector<8x32xf32>
    %c0_2 = arith.constant 0 : index
    %c0_3 = arith.constant 0 : index
    %c0_4 = arith.constant 0 : index
    %3 = vector.load %arg2[%c0_2, %c0_3, %c0_4] : memref<1x1x8xf32, #tpu.memory_space<vmem>>, vector<1x1x8xf32>
    %4 = vector.shape_cast %3 : vector<1x1x8xf32> to vector<1x8xf32>
    %5 = vector.shape_cast %4 : vector<1x8xf32> to vector<1x8xf32>
    %6 = vector.broadcast %5 : vector<1x8xf32> to vector<8x8xf32>
    %c0_5 = arith.constant 0 : index
    %c0_6 = arith.constant 0 : index
    %7 = vector.load %arg3[%c0_5, %c0_6] : memref<32x96xbf16, #tpu.memory_space<vmem>>, vector<32x96xbf16>
    %cst = arith.constant dense<0.000000e+00> : vector<8x96xf32>
    %8 = tpu.matmul %1, %7, %cst {dimension_numbers = #tpu.dot_dimension_numbers<[1], [0], [0], [1], [0, 0, 1, 1], [], []>} : vector<8x32xbf16>, vector<32x96xbf16>, vector<8x96xf32> -> vector<8x96xf32>
    %c0_7 = arith.constant 0 : index
    %c0_8 = arith.constant 0 : index
    %9 = vector.load %arg4[%c0_7, %c0_8] : memref<1x96xf32, #tpu.memory_space<vmem>>, vector<1x96xf32>
    %10 = vector.broadcast %9 : vector<1x96xf32> to vector<8x96xf32>
    %11 = arith.addf %8, %10 : vector<8x96xf32>
    %12 = arith.truncf %11 : vector<8x96xf32> to vector<8x96xbf16>
    %13 = vector.extract_strided_slice %12 {offsets = [0, 0], sizes = [8, 32], strides = [1, 1]} : vector<8x96xbf16> to vector<8x32xbf16>
    %14 = vector.extract_strided_slice %12 {offsets = [0, 32], sizes = [8, 32], strides = [1, 1]} : vector<8x96xbf16> to vector<8x32xbf16>
    %15 = vector.extract_strided_slice %12 {offsets = [0, 64], sizes = [8, 32], strides = [1, 1]} : vector<8x96xbf16> to vector<8x32xbf16>
    %16 = vector.extract_strided_slice %13 {offsets = [0, 0], sizes = [8, 16], strides = [1, 1]} : vector<8x32xbf16> to vector<8x16xbf16>
    %17 = vector.extract_strided_slice %14 {offsets = [0, 0], sizes = [8, 16], strides = [1, 1]} : vector<8x32xbf16> to vector<8x16xbf16>
    %18 = vector.extract_strided_slice %15 {offsets = [0, 0], sizes = [8, 16], strides = [1, 1]} : vector<8x32xbf16> to vector<8x16xbf16>
    %cst_9 = arith.constant dense<0.000000e+00> : vector<8x8xf32>
    %19 = tpu.matmul %16, %17, %cst_9 {dimension_numbers = #tpu.dot_dimension_numbers<[1], [1], [0], [0], [0, 0, 1, 0], [], []>} : vector<8x16xbf16>, vector<8x16xbf16>, vector<8x8xf32> -> vector<8x8xf32>
    %20 = arith.addf %19, %6 : vector<8x8xf32>
    %cst_10 = arith.constant dense<0xFF800000> : vector<8xf32>
    %21 = vector.multi_reduction <maximumf>, %20, %cst_10 [1] : vector<8x8xf32> to vector<8xf32>
    %22 = vector.shape_cast %21 : vector<8xf32> to vector<8x1xf32>
    %23 = vector.broadcast %22 : vector<8x1xf32> to vector<8x8xf32>
    %24 = arith.subf %20, %23 : vector<8x8xf32>
    %25 = math.exp %24 : vector<8x8xf32>
    %cst_11 = arith.constant dense<0.000000e+00> : vector<8xf32>
    %26 = vector.multi_reduction <add>, %25, %cst_11 [1] : vector<8x8xf32> to vector<8xf32>
    %27 = vector.shape_cast %26 : vector<8xf32> to vector<8x1xf32>
    %28 = tpu.reciprocal %27 {approx = true} : vector<8x1xf32> -> vector<8x1xf32>
    %29 = vector.broadcast %28 : vector<8x1xf32> to vector<8x8xf32>
    %30 = arith.mulf %25, %29 : vector<8x8xf32>
    %31 = arith.truncf %30 : vector<8x8xf32> to vector<8x8xbf16>
    %cst_12 = arith.constant dense<0.000000e+00> : vector<8x16xf32>
    %32 = tpu.matmul %31, %18, %cst_12 {dimension_numbers = #tpu.dot_dimension_numbers<[1], [0], [0], [1], [0, 0, 1, 1], [], []>} : vector<8x8xbf16>, vector<8x16xbf16>, vector<8x16xf32> -> vector<8x16xf32>
    %33 = arith.truncf %32 : vector<8x16xf32> to vector<8x16xbf16>
    %34 = vector.extract_strided_slice %13 {offsets = [0, 16], sizes = [8, 16], strides = [1, 1]} : vector<8x32xbf16> to vector<8x16xbf16>
    %35 = vector.extract_strided_slice %14 {offsets = [0, 16], sizes = [8, 16], strides = [1, 1]} : vector<8x32xbf16> to vector<8x16xbf16>
    %36 = vector.extract_strided_slice %15 {offsets = [0, 16], sizes = [8, 16], strides = [1, 1]} : vector<8x32xbf16> to vector<8x16xbf16>
    %cst_13 = arith.constant dense<0.000000e+00> : vector<8x8xf32>
    %37 = tpu.matmul %34, %35, %cst_13 {dimension_numbers = #tpu.dot_dimension_numbers<[1], [1], [0], [0], [0, 0, 1, 0], [], []>} : vector<8x16xbf16>, vector<8x16xbf16>, vector<8x8xf32> -> vector<8x8xf32>
    %38 = arith.addf %37, %6 : vector<8x8xf32>
    %cst_14 = arith.constant dense<0xFF800000> : vector<8xf32>
    %39 = vector.multi_reduction <maximumf>, %38, %cst_14 [1] : vector<8x8xf32> to vector<8xf32>
    %40 = vector.shape_cast %39 : vector<8xf32> to vector<8x1xf32>
    %41 = vector.broadcast %40 : vector<8x1xf32> to vector<8x8xf32>
    %42 = arith.subf %38, %41 : vector<8x8xf32>
    %43 = math.exp %42 : vector<8x8xf32>
    %cst_15 = arith.constant dense<0.000000e+00> : vector<8xf32>
    %44 = vector.multi_reduction <add>, %43, %cst_15 [1] : vector<8x8xf32> to vector<8xf32>
    %45 = vector.shape_cast %44 : vector<8xf32> to vector<8x1xf32>
    %46 = tpu.reciprocal %45 {approx = true} : vector<8x1xf32> -> vector<8x1xf32>
    %47 = vector.broadcast %46 : vector<8x1xf32> to vector<8x8xf32>
    %48 = arith.mulf %43, %47 : vector<8x8xf32>
    %49 = arith.truncf %48 : vector<8x8xf32> to vector<8x8xbf16>
    %cst_16 = arith.constant dense<0.000000e+00> : vector<8x16xf32>
    %50 = tpu.matmul %49, %36, %cst_16 {dimension_numbers = #tpu.dot_dimension_numbers<[1], [0], [0], [1], [0, 0, 1, 1], [], []>} : vector<8x8xbf16>, vector<8x16xbf16>, vector<8x16xf32> -> vector<8x16xf32>
    %51 = arith.truncf %50 : vector<8x16xf32> to vector<8x16xbf16>
    %52 = tpu.concatenate %33, %51 in 1 : vector<8x16xbf16>, vector<8x16xbf16> -> vector<8x32xbf16>
    %c0_17 = arith.constant 0 : index
    %c0_18 = arith.constant 0 : index
    %53 = vector.load %arg5[%c0_17, %c0_18] : memref<32x32xbf16, #tpu.memory_space<vmem>>, vector<32x32xbf16>
    %cst_19 = arith.constant dense<0.000000e+00> : vector<8x32xf32>
    %54 = tpu.matmul %52, %53, %cst_19 {dimension_numbers = #tpu.dot_dimension_numbers<[1], [0], [0], [1], [0, 0, 1, 1], [], []>} : vector<8x32xbf16>, vector<32x32xbf16>, vector<8x32xf32> -> vector<8x32xf32>
    %c0_20 = arith.constant 0 : index
    %c0_21 = arith.constant 0 : index
    %55 = vector.load %arg6[%c0_20, %c0_21] : memref<1x32xf32, #tpu.memory_space<vmem>>, vector<1x32xf32>
    %56 = vector.broadcast %55 : vector<1x32xf32> to vector<8x32xf32>
    %57 = arith.addf %54, %56 : vector<8x32xf32>
    %58 = arith.addf %2, %57 : vector<8x32xf32>
    %c0_22 = arith.constant 0 : index
    %c0_23 = arith.constant 0 : index
    %59 = vector.load %arg7[%c0_22, %c0_23] : memref<1x32xf32, #tpu.memory_space<vmem>>, vector<1x32xf32>
    %c0_24 = arith.constant 0 : index
    %c0_25 = arith.constant 0 : index
    %60 = vector.load %arg8[%c0_24, %c0_25] : memref<1x32xf32, #tpu.memory_space<vmem>>, vector<1x32xf32>
    %cst_26 = arith.constant dense<0.000000e+00> : vector<8xf32>
    %61 = vector.multi_reduction <add>, %58, %cst_26 [1] : vector<8x32xf32> to vector<8xf32>
    %62 = vector.shape_cast %61 : vector<8xf32> to vector<8x1xf32>
    %cst_27 = arith.constant 3.200000e+01 : f32
    %63 = vector.broadcast %cst_27 : f32 to vector<8x1xf32>
    %64 = arith.divf %62, %63 : vector<8x1xf32>
    %65 = vector.broadcast %64 : vector<8x1xf32> to vector<8x32xf32>
    %66 = arith.subf %58, %65 : vector<8x32xf32>
    %67 = arith.mulf %66, %66 : vector<8x32xf32>
    %cst_28 = arith.constant dense<0.000000e+00> : vector<8xf32>
    %68 = vector.multi_reduction <add>, %67, %cst_28 [1] : vector<8x32xf32> to vector<8xf32>
    %69 = vector.shape_cast %68 : vector<8xf32> to vector<8x1xf32>
    %cst_29 = arith.constant 3.200000e+01 : f32
    %70 = vector.broadcast %cst_29 : f32 to vector<8x1xf32>
    %71 = arith.divf %69, %70 : vector<8x1xf32>
    %72 = vector.broadcast %64 : vector<8x1xf32> to vector<8x32xf32>
    %73 = arith.subf %58, %72 : vector<8x32xf32>
    %cst_30 = arith.constant 9.99999996E-13 : f32
    %74 = vector.broadcast %cst_30 : f32 to vector<8x1xf32>
    %75 = arith.addf %71, %74 : vector<8x1xf32>
    %76 = math.rsqrt %75 : vector<8x1xf32>
    %77 = vector.broadcast %76 : vector<8x1xf32> to vector<8x32xf32>
    %78 = arith.mulf %73, %77 : vector<8x32xf32>
    %79 = vector.broadcast %59 : vector<1x32xf32> to vector<8x32xf32>
    %80 = arith.mulf %78, %79 : vector<8x32xf32>
    %81 = vector.broadcast %60 : vector<1x32xf32> to vector<8x32xf32>
    %82 = arith.addf %80, %81 : vector<8x32xf32>
    %83 = arith.truncf %82 : vector<8x32xf32> to vector<8x32xbf16>
    %c0_31 = arith.constant 0 : index
    %c0_32 = arith.constant 0 : index
    %84 = vector.load %arg9[%c0_31, %c0_32] : memref<32x64xbf16, #tpu.memory_space<vmem>>, vector<32x64xbf16>
    %cst_33 = arith.constant dense<0.000000e+00> : vector<8x64xf32>
    %85 = tpu.matmul %83, %84, %cst_33 {dimension_numbers = #tpu.dot_dimension_numbers<[1], [0], [0], [1], [0, 0, 1, 1], [], []>} : vector<8x32xbf16>, vector<32x64xbf16>, vector<8x64xf32> -> vector<8x64xf32>
    %c0_34 = arith.constant 0 : index
    %c0_35 = arith.constant 0 : index
    %86 = vector.load %arg10[%c0_34, %c0_35] : memref<1x64xf32, #tpu.memory_space<vmem>>, vector<1x64xf32>
    %87 = vector.broadcast %86 : vector<1x64xf32> to vector<8x64xf32>
    %88 = arith.addf %85, %87 : vector<8x64xf32>
    %89 = arith.mulf %88, %88 : vector<8x64xf32>
    %90 = arith.mulf %88, %89 : vector<8x64xf32>
    %cst_36 = arith.constant 4.471500e-02 : f32
    %91 = vector.broadcast %cst_36 : f32 to vector<8x64xf32>
    %92 = arith.mulf %91, %90 : vector<8x64xf32>
    %93 = arith.addf %88, %92 : vector<8x64xf32>
    %cst_37 = arith.constant 0.797884583 : f32
    %94 = vector.broadcast %cst_37 : f32 to vector<8x64xf32>
    %95 = arith.mulf %94, %93 : vector<8x64xf32>
    %96 = math.tanh %95 : vector<8x64xf32>
    %cst_38 = arith.constant 1.000000e+00 : f32
    %97 = vector.broadcast %cst_38 : f32 to vector<8x64xf32>
    %98 = arith.addf %97, %96 : vector<8x64xf32>
    %cst_39 = arith.constant 5.000000e-01 : f32
    %99 = vector.broadcast %cst_39 : f32 to vector<8x64xf32>
    %100 = arith.mulf %99, %98 : vector<8x64xf32>
    %101 = arith.mulf %88, %100 : vector<8x64xf32>
    %102 = arith.truncf %101 : vector<8x64xf32> to vector<8x64xbf16>
    %c0_40 = arith.constant 0 : index
    %c0_41 = arith.constant 0 : index
    %103 = vector.load %arg11[%c0_40, %c0_41] : memref<64x32xbf16, #tpu.memory_space<vmem>>, vector<64x32xbf16>
    %cst_42 = arith.constant dense<0.000000e+00> : vector<8x32xf32>
    %104 = tpu.matmul %102, %103, %cst_42 {dimension_numbers = #tpu.dot_dimension_numbers<[1], [0], [0], [1], [0, 0, 1, 1], [], []>} : vector<8x64xbf16>, vector<64x32xbf16>, vector<8x32xf32> -> vector<8x32xf32>
    %c0_43 = arith.constant 0 : index
    %c0_44 = arith.constant 0 : index
    %105 = vector.load %arg12[%c0_43, %c0_44] : memref<1x32xf32, #tpu.memory_space<vmem>>, vector<1x32xf32>
    %106 = vector.broadcast %105 : vector<1x32xf32> to vector<8x32xf32>
    %107 = arith.addf %104, %106 : vector<8x32xf32>
    %108 = arith.addf %82, %107 : vector<8x32xf32>
    %c0_45 = arith.constant 0 : index
    %c0_46 = arith.constant 0 : index
    %109 = vector.load %arg13[%c0_45, %c0_46] : memref<1x32xf32, #tpu.memory_space<vmem>>, vector<1x32xf32>
    %c0_47 = arith.constant 0 : index
    %c0_48 = arith.constant 0 : index
    %110 = vector.load %arg14[%c0_47, %c0_48] : memref<1x32xf32, #tpu.memory_space<vmem>>, vector<1x32xf32>
    %cst_49 = arith.constant dense<0.000000e+00> : vector<8xf32>
    %111 = vector.multi_reduction <add>, %108, %cst_49 [1] : vector<8x32xf32> to vector<8xf32>
    %112 = vector.shape_cast %111 : vector<8xf32> to vector<8x1xf32>
    %cst_50 = arith.constant 3.200000e+01 : f32
    %113 = vector.broadcast %cst_50 : f32 to vector<8x1xf32>
    %114 = arith.divf %112, %113 : vector<8x1xf32>
    %115 = vector.broadcast %114 : vector<8x1xf32> to vector<8x32xf32>
    %116 = arith.subf %108, %115 : vector<8x32xf32>
    %117 = arith.mulf %116, %116 : vector<8x32xf32>
    %cst_51 = arith.constant dense<0.000000e+00> : vector<8xf32>
    %118 = vector.multi_reduction <add>, %117, %cst_51 [1] : vector<8x32xf32> to vector<8xf32>
    %119 = vector.shape_cast %118 : vector<8xf32> to vector<8x1xf32>
    %cst_52 = arith.constant 3.200000e+01 : f32
    %120 = vector.broadcast %cst_52 : f32 to vector<8x1xf32>
    %121 = arith.divf %119, %120 : vector<8x1xf32>
    %122 = vector.broadcast %114 : vector<8x1xf32> to vector<8x32xf32>
    %123 = arith.subf %108, %122 : vector<8x32xf32>
    %cst_53 = arith.constant 9.99999996E-13 : f32
    %124 = vector.broadcast %cst_53 : f32 to vector<8x1xf32>
    %125 = arith.addf %121, %124 : vector<8x1xf32>
    %126 = math.rsqrt %125 : vector<8x1xf32>
    %127 = vector.broadcast %126 : vector<8x1xf32> to vector<8x32xf32>
    %128 = arith.mulf %123, %127 : vector<8x32xf32>
    %129 = vector.broadcast %109 : vector<1x32xf32> to vector<8x32xf32>
    %130 = arith.mulf %128, %129 : vector<8x32xf32>
    %131 = vector.broadcast %110 : vector<1x32xf32> to vector<8x32xf32>
    %132 = arith.addf %130, %131 : vector<8x32xf32>
    %133 = vector.extract_strided_slice %132 {offsets = [0, 0], sizes = [1, 32], strides = [1, 1]} : vector<8x32xf32> to vector<1x32xf32>
    %134 = arith.truncf %133 : vector<1x32xf32> to vector<1x32xbf16>
    %c0_54 = arith.constant 0 : index
    %c0_55 = arith.constant 0 : index
    %135 = vector.load %arg15[%c0_54, %c0_55] : memref<32x128xbf16, #tpu.memory_space<vmem>>, vector<32x128xbf16>
    %cst_56 = arith.constant dense<0.000000e+00> : vector<1x128xf32>
    %136 = tpu.matmul %134, %135, %cst_56 {dimension_numbers = #tpu.dot_dimension_numbers<[1], [0], [0], [1], [0, 0, 1, 1], [], []>} : vector<1x32xbf16>, vector<32x128xbf16>, vector<1x128xf32> -> vector<1x128xf32>
    %c0_57 = arith.constant 0 : index
    %c0_58 = arith.constant 0 : index
    %137 = vector.load %arg16[%c0_57, %c0_58] : memref<1x128xf32, #tpu.memory_space<vmem>>, vector<1x128xf32>
    %138 = arith.addf %136, %137 : vector<1x128xf32>
    %c0_59 = arith.constant 0 : index
    %c0_60 = arith.constant 0 : index
    %c0_61 = arith.constant 0 : index
    %139 = vector.load %arg17[%c0_59, %c0_60, %c0_61] : memref<1x1x128xf32, #tpu.memory_space<vmem>>, vector<1x1x128xf32>
    %140 = vector.shape_cast %139 : vector<1x1x128xf32> to vector<1x128xf32>
    %141 = vector.shape_cast %138 : vector<1x128xf32> to vector<1x1x128xf32>
    tpu.vector_store %arg17[%c0_59, %c0_60, %c0_61], %141 {strides = array<i32>} : memref<1x1x128xf32, #tpu.memory_space<vmem>>, vector<1x1x128xf32>,
    return
  }
  func.func @transform_0(%arg0: i32) -> (i32, i32, i32) {
    %c0_i32 = arith.constant 0 : i32
    %c0_i32_0 = arith.constant 0 : i32
    %c0_i32_1 = arith.constant 0 : i32
    return %arg0, %c0_i32, %c0_i32_0 : i32, i32, i32
  }
  func.func @transform_1(%arg0: i32) -> (i32, i32, i32) {
    %c0_i32 = arith.constant 0 : i32
    %c0_i32_0 = arith.constant 0 : i32
    %c0_i32_1 = arith.constant 0 : i32
    return %arg0, %c0_i32, %c0_i32_0 : i32, i32, i32
  }
  func.func @transform_2(%arg0: i32) -> (i32, i32) {
    %c0_i32 = arith.constant 0 : i32
    %c0_i32_0 = arith.constant 0 : i32
    %c0_i32_1 = arith.constant 0 : i32
    return %c0_i32, %c0_i32_0 : i32, i32
  }
  func.func @transform_3(%arg0: i32) -> (i32, i32) {
    %c0_i32 = arith.constant 0 : i32
    %c0_i32_0 = arith.constant 0 : i32
    %c0_i32_1 = arith.constant 0 : i32
    return %c0_i32, %c0_i32_0 : i32, i32
  }
  func.func @transform_4(%arg0: i32) -> (i32, i32) {
    %c0_i32 = arith.constant 0 : i32
    %c0_i32_0 = arith.constant 0 : i32
    %c0_i32_1 = arith.constant 0 : i32
    return %c0_i32, %c0_i32_0 : i32, i32
  }
  func.func @transform_5(%arg0: i32) -> (i32, i32) {
    %c0_i32 = arith.constant 0 : i32
    %c0_i32_0 = arith.constant 0 : i32
    %c0_i32_1 = arith.constant 0 : i32
    return %c0_i32, %c0_i32_0 : i32, i32
  }
  func.func @transform_6(%arg0: i32) -> (i32, i32) {
    %c0_i32 = arith.constant 0 : i32
    %c0_i32_0 = arith.constant 0 : i32
    %c0_i32_1 = arith.constant 0 : i32
    return %c0_i32, %c0_i32_0 : i32, i32
  }
  func.func @transform_7(%arg0: i32) -> (i32, i32) {
    %c0_i32 = arith.constant 0 : i32
    %c0_i32_0 = arith.constant 0 : i32
    %c0_i32_1 = arith.constant 0 : i32
    return %c0_i32, %c0_i32_0 : i32, i32
  }
  func.func @transform_8(%arg0: i32) -> (i32, i32) {
    %c0_i32 = arith.constant 0 : i32
    %c0_i32_0 = arith.constant 0 : i32
    %c0_i32_1 = arith.constant 0 : i32
    return %c0_i32, %c0_i32_0 : i32, i32
  }
  func.func @transform_9(%arg0: i32) -> (i32, i32) {
    %c0_i32 = arith.constant 0 : i32
    %c0_i32_0 = arith.constant 0 : i32
    %c0_i32_1 = arith.constant 0 : i32
    return %c0_i32, %c0_i32_0 : i32, i32
  }
  func.func @transform_10(%arg0: i32) -> (i32, i32) {
    %c0_i32 = arith.constant 0 : i32
    %c0_i32_0 = arith.constant 0 : i32
    %c0_i32_1 = arith.constant 0 : i32
    return %c0_i32, %c0_i32_0 : i32, i32
  }
  func.func @transform_11(%arg0: i32) -> (i32, i32) {
    %c0_i32 = arith.constant 0 : i32
    %c0_i32_0 = arith.constant 0 : i32
    %c0_i32_1 = arith.constant 0 : i32
    return %c0_i32, %c0_i32_0 : i32, i32
  }
  func.func @transform_12(%arg0: i32) -> (i32, i32) {
    %c0_i32 = arith.constant 0 : i32
    %c0_i32_0 = arith.constant 0 : i32
    %c0_i32_1 = arith.constant 0 : i32
    return %c0_i32, %c0_i32_0 : i32, i32
  }
  func.func @transform_13(%arg0: i32) -> (i32, i32) {
    %c0_i32 = arith.constant 0 : i32
    %c0_i32_0 = arith.constant 0 : i32
    %c0_i32_1 = arith.constant 0 : i32
    return %c0_i32, %c0_i32_0 : i32, i32
  }
  func.func @transform_14(%arg0: i32) -> (i32, i32) {
    %c0_i32 = arith.constant 0 : i32
    %c0_i32_0 = arith.constant 0 : i32
    %c0_i32_1 = arith.constant 0 : i32
    return %c0_i32, %c0_i32_0 : i32, i32
  }
  func.func @transform_15(%arg0: i32) -> (i32, i32) {
    %c0_i32 = arith.constant 0 : i32
    %c0_i32_0 = arith.constant 0 : i32
    %c0_i32_1 = arith.constant 0 : i32
    return %c0_i32, %c0_i32_0 : i32, i32
  }
  func.func @transform_16(%arg0: i32) -> (i32, i32, i32) {
    %c0_i32 = arith.constant 0 : i32
    %c0_i32_0 = arith.constant 0 : i32
    %c0_i32_1 = arith.constant 0 : i32
    return %arg0, %c0_i32, %c0_i32_0 : i32, i32, i32
  }
}

</mosaic_0001>

<bundles_post_ra>
// kernel: sentiment_classifier_forward.2
= control target key start
LH: loop header
LB: loop body
LE: loop exit
PB: predicated region body
PF: predicated region fallthrough
CT: control target
= control target key end

     0   :  { %s1385_s29 = smov 0   ;;  %s1519_s0 = inlined_call_operand.vmem [shape: bf16[2,8,32], index: 0, kind: input, shape index: {}]   ;;  %s1520_s1 = inlined_call_operand.vmem [shape: f32[2,1,8], index: 1, kind: input, shape index: {}]   ;;  %s1521_s2 = inlined_call_operand.vmem [shape: bf16[32,96], index: 2, kind: input, shape index: {}]   ;;  %s1522_s3 = inlined_call_operand.vmem [shape: f32[1,96], index: 3, kind: input, shape index: {}]   ;;  %s1523_s4 = inlined_call_operand.vmem [shape: bf16[32,32], index: 4, kind: input, shape index: {}]   ;;  %s1524_s5 = inlined_call_operand.vmem [shape: f32[1,32], index: 5, kind: input, shape index: {}]   ;;  %s1525_s6 = inlined_call_operand.vmem [shape: f32[1,32], index: 6, kind: input, shape index: {}]   ;;  %s1526_s7 = inlined_call_operand.vmem [shape: f32[1,32], index: 7, kind: input, shape index: {}]   ;;  %s1527_s8 = inlined_call_operand.vmem [shape: bf16[32,64], index: 8, kind: input, shape index: {}]   ;;  %s1528_s9 = inlined_call_operand.vmem [shape: f32[1,64], index: 9, kind: input, shape index: {}]   ;;  %s1529_s10 = inlined_call_operand.vmem [shape: bf16[64,32], index: 10, kind: input, shape index: {}]   ;;  %s1530_s11 = inlined_call_operand.vmem [shape: f32[1,32], index: 11, kind: input, shape index: {}]   ;;  %s1531_s12 = inlined_call_operand.vmem [shape: f32[1,32], index: 12, kind: input, shape index: {}]   ;;  %s1532_s13 = inlined_call_operand.vmem [shape: f32[1,32], index: 13, kind: input, shape index: {}]   ;;  %s1533_s14 = inlined_call_operand.vmem [shape: bf16[2,8,32], index: 14, kind: output, shape index: {}]  }
   0x1 LB: > { %s1136_s30 = sadd.s32 4294967295, %s1300_s29   ;;  %p1140_p0 = scmp.ge.s32.totalorder %s1300_s29, 1  ;;  %s1300_s29 = sphi %s1385_s29, %s24_s29  }
   0x2   : > { %p419_p1 = scmp.lt.s32.totalorder %s1300_s29, 3 }
   0x4   : > { %p420_p2 = pnand %p1140_p0, %p419_p1 }
   0x5   : > { %p466_p3 = scmp.lt.s32.totalorder (!%p420_p2), %s1136_s30, 1  ;;  %s1304_s25 = smov (!%p420_p2), 112  }
   0x6   : > { %423 = sbr.rel (%p420_p2) target bundleno = 2410 (0x96a), region = 76  ;;  %s1305_s26 = smov (!%p420_p2), 96  }
   0x7   : > { %s1306_s27 = smov (!%p420_p2), 80   ;;  %s1307_s17 = smov (!%p420_p2), 64  }
   0x8   : > { %s1308_s18 = smov (!%p420_p2), 48   ;;  %s1309_s24 = smov (!%p420_p2), 16  }
   0xb   : > { %v1270_v0 = vld [vmem:[%s1521_s2 + $0x8] sm:$0xff]   ;;  %v1302_v1 = vmov 0.0   ;;  %v1271_v2 = vld [vmem:[%s1521_s2] sm:$0xff]   ;;  %vm1303_vm0 = vmmov 0   ;;  %s1535_s30 = smov (!%p466_p3, %s1136_s30), 1  ;;  %vm510_vm1 = vcmask 261120  }
   0xc   : > { %1194 = vmatprep.subr.bf16.mxu0 %v1302_v1  ;;  %1202 = vmatprep.subr.bf16.mxu1 %v1302_v1  ;;  %s1141_s19 = sshll.u32 %s1535_s30, 2  ;;  %v1144_v4 = vld [vmem:[%s1522_s3] ss:$0 sm:$0xff]  ;;  %vm558_vm2 = vcmask 130048   ;;  %s472_s16 = scalar_lea.vmem %s1520_s1, %s1535_s30  ;;  %vm605_vm3 = vcmask 64512   ;;  %vm623_vm4 = vcmask 1043456  }
   0xd   : > { %1195 = vmatpush3.bf16.msra.mxu0 %v1270_v0  ;;  %1198 = vmatprep.mubr.msk.bf16.mxu0 %vm1303_vm0, %v1302_v1  ;;  %s469_s22 = scalar_lea.vmem %s1519_s0, %s1141_s19  ;;  %v1143_v16 = vld [vmem:[%s472_s16] ss:$0 sm:$0xff]  ;;  %v1272_v51 = vld [vmem:[%s1523_s4 + $0x8] sm:$0xff]   ;;  %vm997_vm5 = vcmask 523264   ;;  %vm1072_vm6 = vcmask 257024  }
   0xe   : > { %1196 = vmatprep.subr.bf16.mxu0 %v1302_v1  ;;  %1204 = vmatprep.mubr.msk.bf16.mxu1 %vm1303_vm0, %v1302_v1  ;;  %v1415_v3 = vld [vmem:[%s469_s22] sm:$0xf] }
   0xf   : > { %v1273_v52 = vld [vmem:[%s1523_s4] sm:$0xff]  }
  0x11   : > { %1197 = vmatpush3.bf16.msra.mxu0 %v1271_v2  ;;  %v1152_v2 = vld [vmem:[%s1524_s5] ss:$0 sm:$0xff] }
  0x12   : > { %1208 = vmatprep.subr.bf16.mxu0 %v1302_v1 }
  0x14   : > { %1199 = vmatmul.mubr.msk.bf16.vlgmr.msra.gmra.mxu0 %vm510_vm1, %v1415_v3 }
  0x15   : > { %1210 = vmatprep.mubr.msk.bf16.mxu0 %vm1303_vm0, %v1302_v1 }
  0xd4   : > { %v548_v5 = vpop.f32.mrf.mxu0 }
  0xd5   : > { %v549_v6 = vadd.f32 %v1144_v4, %v548_v5  ;;  %v479_v4 = vunpack.c.l.bf16 %v1415_v3  ;;  %v1274_v3 = vld [vmem:[%s1527_s8 + $0x8] sm:$0xff]  }
  0xd6   : > { %v1200_v7 = vpop.f32.mrf.mxu0 }
  0xd7   : > { %v554_v8 = vpack.c.bf16 %v549_v6, %v549_v6 }
  0xd8   : > { %v551_v9 = vpop.f32.mrf.mxu0 }
  0xd9   : > { %668 = vrot.lane.b32.xlu1 %v554_v8, %s1304_s25  ;;  %556 = vrot.lane.b32.xlu0 %v554_v8, %s1305_s26 }
  0xda   : > { %v1201_v10 = vpop.f32.mrf.mxu0 }
  0xdd   : > { %670 = vrot.lane.b32.xlu0 %v554_v8, %s1306_s27  ;;  %s476_s27 = scalar_lea.vmem %s1533_s14, %s1141_s19 }
 0x14b   : > { %v557_v11 = vpop.permute.xlu0 %556  ;;  %v669_v15 = vpop.permute.xlu1 %668 }
 0x14c   : > { %v563_v12 = vsel %vm558_vm2, %v557_v11, 0 }
 0x14d   : > { %1203 = vmatpush3.bf16.xpose.msra.mxu1 %v563_v12 }
 0x14e   : > { %1214 = vmatprep.subr.bf16.mxu1 %v1302_v1 }
 0x14f   : > { %v671_v13 = vpop.permute.xlu0 %670 }
 0x150   : > { %v676_v14 = vsel %vm558_vm2, %v671_v13, 0 }
 0x154   : > { %1205 = vmatmul.mubr.msk.bf16.vlgmr.msra.gmra.mxu1 %vm558_vm2, %v554_v8 }
 0x155   : > { %1215 = vmatpush3.bf16.xpose.msra.mxu1 %v676_v14  ;;  %1216 = vmatprep.mubr.msk.bf16.mxu1 %vm1303_vm0, %v1302_v1 }
 0x156   : > { %1226 = vmatprep.subr.bf16.mxu1 %v1302_v1 }
 0x15c   : > { %1217 = vmatmul.mubr.msk.bf16.vlgmr.msra.gmra.mxu1 %vm558_vm2, %v669_v15 }
 0x15d   : > { %1230 = vmatprep.mubr.msk.bf16.mxu1 %vm1303_vm0, %v1302_v1  ;;  %1227 = vmatpush3.bf16.msra.mxu1 %v1272_v51 }
 0x15e   : > { %1228 = vmatprep.subr.bf16.mxu1 %v1302_v1 }
 0x161   : > { %1229 = vmatpush3.bf16.msra.mxu1 %v1273_v52 }
 0x162   : > { %1242 = vmatprep.subr.bf16.mxu1 %v1302_v1 }
 0x214   : > { %v599_v17 = vpop.f32.mrf.mxu1 }
 0x215   : > { %v600_v18 = vadd.f32 %v1143_v16, %v599_v17  ;;  %v1275_v17 = vld [vmem:[%s1527_s8] sm:$0xff]  }
 0x216   : > { %v1206_v19 = vpop.f32.mrf.mxu1 }
 0x217   : > { %v606_v20 = vsel %vm605_vm3, %v600_v18, -inf }
 0x218   : > { %607 = vmax.xlane.f32.xlu1 %v606_v20  ;;  %v602_v21 = vpop.f32.mrf.mxu1 }
 0x21a   : > { %v1207_v22 = vpop.f32.mrf.mxu1 }
 0x21b   : > { %v1156_v22 = vld [vmem:[%s1525_s6] ss:$0 sm:$0xff] }
 0x21c   : > { %v712_v23 = vpop.f32.mrf.mxu1 }
 0x21d   : > { %v713_v24 = vadd.f32 %v1143_v16, %v712_v23 }
 0x21e   : > { %v1218_v25 = vpop.f32.mrf.mxu1 }
 0x21f   : > { %v718_v26 = vsel %vm605_vm3, %v713_v24, -inf }
 0x220   : > { %719 = vmax.xlane.f32.xlu0 %v718_v26  ;;  %v715_v27 = vpop.f32.mrf.mxu1 }
 0x222   : > { %v1219_v28 = vpop.f32.mrf.mxu1 }
 0x223   : > { %v1276_v28 = vld [vmem:[%s1529_s10 + $0x18] sm:$0xff]  }
 0x2a1   : > { %v608_v29 = vpop.xlane.xlu1 %607 }
 0x2a2   : > { %v609_v30 = vsub.f32 %v600_v18, %v608_v29  ;;  %v1277_v29 = vld [vmem:[%s1529_s10 + $0x10] sm:$0xff]  }
 0x2a4   : > { %v610_v31 = vmul.f32 1.442695, %v609_v30  ;;  %v1278_v30 = vld [vmem:[%s1529_s10 + $0x8] sm:$0xff]  }
 0x2a6   : > { %1280 = vpow2.f32 %v610_v31  ;;  %v1279_v31 = vld [vmem:[%s1529_s10] sm:$0xff]  }
 0x2a9   : > { %v720_v32 = vpop.xlane.xlu0 %719 }
 0x2aa   : > { %v721_v33 = vsub.f32 %v713_v24, %v720_v32  ;;  %v1157_v24 = vld [vmem:[%s1526_s7] ss:$0 sm:$0xff] }
 0x2ab   : > { %v1158_v32 = vld [vmem:[%s1528_s9] ss:$0 sm:$0xff] }
 0x2ac   : > { %v722_v34 = vmul.f32 1.442695, %v721_v33 }
 0x2ae   : > { %1282 = vpow2.f32 %v722_v34 }
 0x2b3   : > { %v1281_v35 = vpop.eup %1280 }
 0x2b4   : > { %v612_v36 = vsel %vm605_vm3, %v1281_v35, 0.0 }
 0x2b5   : > { %613 = vadd.xlane.f32.xlu0 %v612_v36 }
 0x2bb   : > { %v1283_v37 = vpop.eup %1282 }
 0x2bc   : > { %v724_v38 = vsel %vm605_vm3, %v1283_v37, 0.0 }
 0x2bd   : > { %725 = vadd.xlane.f32.xlu1 %v724_v38 }
 0x2cb   : > { %618 = vrot.lane.b32.xlu0 %v554_v8, %s1307_s17 }
 0x2ce   : > { %730 = vrot.lane.b32.xlu1 %v554_v8, %s1308_s18 }
 0x33e   : > { %v614_v39 = vpop.xlane.xlu0 %613 }
 0x33f   : > { %1284 = vrcp.f32 %v614_v39 }
 0x342   : > { %v619_v40 = vpop.permute.xlu0 %618 }
 0x343   : > { %v625_v41 = vsel %vm623_vm4, %v619_v40, 0 }
 0x344   : > { %1209 = vmatpush3.bf16.msra.mxu0 %v625_v41 }
 0x345   : > { %1220 = vmatprep.subr.bf16.mxu0 %v1302_v1 }
 0x346   : > { %v726_v42 = vpop.xlane.xlu1 %725 }
 0x347   : > { %1286 = vrcp.f32 %v726_v42 }
 0x34a   : > { %v731_v45 = vpop.permute.xlu1 %730 }
 0x34b   : > { %v736_v47 = vsel %vm623_vm4, %v731_v45, 0 }
 0x34c   : > { %v1285_v43 = vpop.eup %1284 }
 0x34d   : > { %v616_v44 = vmul.f32 %v1285_v43, %v1281_v35 }
 0x34f   : > { %v617_v46 = vpack.c.bf16 %v616_v44, %v616_v44 }
 0x351   : > { %1211 = vmatmul.mubr.msk.bf16.vlgmr.msra.gmra.mxu0 %vm605_vm3, %v617_v46 }
 0x352   : > { %1221 = vmatpush3.bf16.msra.mxu0 %v736_v47  ;;  %1222 = vmatprep.mubr.msk.bf16.mxu0 %vm1303_vm0, %v1302_v1  ;;  %v1162_v47 = vld [vmem:[%s1530_s11] ss:$0 sm:$0xff] }
 0x353   : > { %1234 = vmatprep.subr.bf16.mxu0 %v1302_v1 }
 0x354   : > { %v1287_v48 = vpop.eup %1286 }
 0x355   : > { %v728_v49 = vmul.f32 %v1287_v48, %v1283_v37 }
 0x357   : > { %v729_v50 = vpack.c.bf16 %v728_v49, %v728_v49 }
 0x359   : > { %1223 = vmatmul.mubr.msk.bf16.vlgmr.msra.gmra.mxu0 %vm605_vm3, %v729_v50 }
 0x35a   : > { %1238 = vmatprep.mubr.msk.bf16.mxu0 %vm1303_vm0, %v1302_v1  ;;  %1235 = vmatpush3.bf16.msra.mxu0 %v1274_v3 }
 0x35b   : > { %1236 = vmatprep.subr.bf16.mxu0 %v1302_v1 }
 0x35e   : > { %1237 = vmatpush3.bf16.msra.mxu0 %v1275_v17 }
 0x411   : > { %v661_v53 = vpop.f32.mrf.mxu0 }
 0x412   : > { %v667_v62 = vpack.c.bf16 %v661_v53, %v661_v53 }
 0x413   : > { %v1212_v54 = vpop.f32.mrf.mxu0 }
 0x415   : > { %v664_v55 = vpop.f32.mrf.mxu0 }
 0x417   : > { %v1213_v56 = vpop.f32.mrf.mxu0 }
 0x419   : > { %v772_v57 = vpop.f32.mrf.mxu0 }
 0x41a   : > { %v778_v58 = vpack.c.bf16 %v772_v57, %v772_v57 }
 0x41b   : > { %v1224_v59 = vpop.f32.mrf.mxu0 }
 0x41c   : > { %780 = vrot.lane.b32.xlu1 %v778_v58, %s1309_s24 }
 0x41d   : > { %v775_v60 = vpop.f32.mrf.mxu0 }
 0x41f   : > { %v1225_v61 = vpop.f32.mrf.mxu0 }
 0x48e   : > { %v781_v63 = vpop.permute.xlu1 %780 }
 0x48f   : > { %v784_v0 = vsel %vm558_vm2, %v667_v62, %v781_v63 }
 0x490   : > { %1231 = vmatmul.mubr.msk.bf16.vlgmr.msra.gmra.mxu1 %vm510_vm1, %v784_v0  ;;  %v1168_v0 = vld [vmem:[%s1531_s12] ss:$0 sm:$0xff] }
 0x491   : > { %1250 = vmatprep.mubr.msk.bf16.mxu1 %vm1303_vm0, %v1302_v1  ;;  %1243 = vmatpush3.bf16.msra.mxu1 %v1276_v28 }
 0x492   : > { %1244 = vmatprep.subr.bf16.mxu1 %v1302_v1 }
 0x495   : > { %1245 = vmatpush3.bf16.msra.mxu1 %v1277_v29 }
 0x496   : > { %1246 = vmatprep.subr.bf16.mxu1 %v1302_v1 }
 0x499   : > { %1247 = vmatpush3.bf16.msra.mxu1 %v1278_v30 }
 0x49a   : > { %1248 = vmatprep.subr.bf16.mxu1 %v1302_v1 }
 0x49d   : > { %1249 = vmatpush3.bf16.msra.mxu1 %v1279_v31 }
 0x550   : > { %v844_v5 = vpop.f32.mrf.mxu1 }
 0x551   : > { %v845_v6 = vadd.f32 %v1152_v2, %v844_v5 }
 0x552   : > { %v1232_v7 = vpop.f32.mrf.mxu1 }
 0x553   : > { %v850_v8 = vadd.f32 %v845_v6, %v479_v4  ;;  %v1169_v4 = vld [vmem:[%s1532_s13] ss:$0 sm:$0xff] }
 0x554   : > { %v847_v9 = vpop.f32.mrf.mxu1 }
 0x555   : > { %v853_v10 = vsel %vm510_vm1, %v850_v8, 0.0 }
 0x556   : > { %v1233_v11 = vpop.f32.mrf.mxu1  ;;  %854 = vadd.xlane.f32.xlu0 %v853_v10 }
 0x5df   : > { %v855_v12 = vpop.xlane.xlu0 %854 }
 0x5e0   : > { %v857_v13 = vmul.f32 0.03125, %v855_v12 }
 0x5e2   : > { %v858_v14 = vsub.f32 %v850_v8, %v857_v13 }
 0x5e4   : > { %v859_v15 = vmul.f32 %v858_v14, %v858_v14 }
 0x5e6   : > { %v860_v16 = vsel %vm510_vm1, %v859_v15, 0.0 }
 0x5e7   : > { %861 = vadd.xlane.f32.xlu1 %v860_v16 }
 0x670   : > { %v862_v18 = vpop.xlane.xlu1 %861 }
 0x671   : > { %v863_v19 = vmul.f32 0.03125, %v862_v18 }
 0x673   : > { %v864_v20 = vadd.f32 1e-12, %v863_v19 }
 0x675   : > { %1288 = vrsqrt.f32 %v864_v20 }
 0x682   : > { %v1289_v21 = vpop.eup %1288 }
 0x683   : > { %v866_v23 = vmul.f32 %v1289_v21, %v858_v14 }
 0x685   : > { %v873_v25 = vmul.f32 %v1156_v22, %v866_v23 }
 0x687   : > { %v880_v26 = vadd.f32 %v1157_v24, %v873_v25 }
 0x689   : > { %v881_v27 = vpack.c.bf16 %v880_v26, %v880_v26 }
 0x68b   : > { %1239 = vmatmul.mubr.msk.bf16.vlgmr.msra.gmra.mxu0 %vm510_vm1, %v881_v27 }
 0x74b   : > { %v942_v33 = vpop.f32.mrf.mxu0 }
 0x74c   : > { %v943_v34 = vadd.f32 %v1158_v32, %v942_v33 }
 0x74d   : > { %v1240_v35 = vpop.f32.mrf.mxu0 }
 0x74e   : > { %v948_v36 = vmul.f32 %v943_v34, %v943_v34 }
 0x74f   : > { %v945_v37 = vpop.f32.mrf.mxu0 }
 0x750   : > { %v949_v38 = vmul.f32 %v948_v36, %v943_v34 }
 0x751   : > { %v1241_v39 = vpop.f32.mrf.mxu0 }
 0x752   : > { %v950_v40 = vmul.f32 0.044715, %v949_v38 }
 0x754   : > { %v951_v41 = vadd.f32 %v950_v40, %v943_v34 }
 0x756   : > { %v952_v42 = vmul.f32 0.7978846, %v951_v41 }
 0x758   : > { %1290 = vtanh.f32 %v952_v42 }
 0x765   : > { %v1291_v1 = vpop.eup %1290 }
 0x766   : > { %v954_v43 = vadd.f32 1.0, %v1291_v1 }
 0x768   : > { %v955_v44 = vmul.f32 0.5, %v954_v43 }
 0x76a   : > { %v956_v45 = vmul.f32 %v955_v44, %v943_v34 }
 0x76c   : > { %v957_v46 = vpack.c.bf16 %v956_v45, %v956_v45 }
 0x76e   : > { %1251 = vmatmul.mubr.msk.bf16.vlgmr.msra.gmra.mxu1 %vm997_vm5, %v957_v46 }
 0x82e   : > { %v1035_v48 = vpop.f32.mrf.mxu1 }
 0x82f   : > { %v1036_v49 = vadd.f32 %v1162_v47, %v1035_v48 }
 0x830   : > { %v1252_v50 = vpop.f32.mrf.mxu1 }
 0x831   : > { %v1041_v51 = vadd.f32 %v1036_v49, %v880_v26 }
 0x832   : > { %v1038_v52 = vpop.f32.mrf.mxu1 }
 0x833   : > { %v1044_v53 = vsel %vm510_vm1, %v1041_v51, 0.0 }
 0x834   : > { %1045 = vadd.xlane.f32.xlu0 %v1044_v53  ;;  %v1253_v54 = vpop.f32.mrf.mxu1 }
 0x8bd   : > { %v1046_v55 = vpop.xlane.xlu0 %1045 }
 0x8be   : > { %v1047_v56 = vmul.f32 0.03125, %v1046_v55 }
 0x8c0   : > { %v1048_v57 = vsub.f32 %v1041_v51, %v1047_v56 }
 0x8c2   : > { %v1049_v58 = vmul.f32 %v1048_v57, %v1048_v57 }
 0x8c4   : > { %v1050_v59 = vsel %vm510_vm1, %v1049_v58, 0.0 }
 0x8c5   : > { %1051 = vadd.xlane.f32.xlu0 %v1050_v59 }
 0x94e   : > { %v1052_v60 = vpop.xlane.xlu0 %1051 }
 0x94f   : > { %v1053_v61 = vmul.f32 0.03125, %v1052_v60 }
 0x951   : > { %v1054_v62 = vadd.f32 1e-12, %v1053_v61 }
 0x953   : > { %1292 = vrsqrt.f32 %v1054_v62 }
 0x960   : > { %v1293_v63 = vpop.eup %1292 }
 0x961   : > { %v1056_v2 = vmul.f32 %v1293_v63, %v1048_v57 }
 0x963   : > { %v1063_v5 = vmul.f32 %v1168_v0, %v1056_v2 }
 0x965   : > { %v1070_v6 = vadd.f32 %v1169_v4, %v1063_v5 }
 0x967   : > { %v1071_v7 = vpack.c.bf16 %v1070_v6, %v1070_v6 }
 0x969   : > { %1073 = vst.msk [vmem:[%s476_s27] sm:$0xf] %vm1072_vm6, %v1071_v7 }
 0x96a PF: > { %s24_s29 = sadd.s32 1, %s1300_s29  }
 0x96b   : > { %p21_p4 = scmp.ge.s32.totalorder %s24_s29, 4  }
 0x96d   :  { %23 = sbr.rel (!%p21_p4) target bundleno = 1 (0x1), region = 109 }

// kernel: sentiment_classifier_forward.3
= control target key start
LH: loop header
LB: loop body
LE: loop exit
PB: predicated region body
PF: predicated region fallthrough
CT: control target
= control target key end

     0   :  { %s1849_s0 = inlined_call_operand.vmem [shape: bf16[2,8,32], index: 0, kind: input, shape index: {}]   ;;  %s1850_s1 = inlined_call_operand.vmem [shape: f32[2,1,8], index: 1, kind: input, shape index: {}]   ;;  %s1851_s2 = inlined_call_operand.vmem [shape: bf16[32,96], index: 2, kind: input, shape index: {}]   ;;  %s1852_s3 = inlined_call_operand.vmem [shape: f32[1,96], index: 3, kind: input, shape index: {}]   ;;  %s1853_s4 = inlined_call_operand.vmem [shape: bf16[32,32], index: 4, kind: input, shape index: {}]   ;;  %s1854_s5 = inlined_call_operand.vmem [shape: f32[1,32], index: 5, kind: input, shape index: {}]   ;;  %s1855_s6 = inlined_call_operand.vmem [shape: f32[1,32], index: 6, kind: input, shape index: {}]   ;;  %s1856_s7 = inlined_call_operand.vmem [shape: f32[1,32], index: 7, kind: input, shape index: {}]   ;;  %s1857_s8 = inlined_call_operand.vmem [shape: bf16[32,64], index: 8, kind: input, shape index: {}]   ;;  %s1858_s9 = inlined_call_operand.vmem [shape: f32[1,64], index: 9, kind: input, shape index: {}]   ;;  %s1859_s10 = inlined_call_operand.vmem [shape: bf16[64,32], index: 10, kind: input, shape index: {}]   ;;  %s1860_s11 = inlined_call_operand.vmem [shape: f32[1,32], index: 11, kind: input, shape index: {}]   ;;  %s1861_s12 = inlined_call_operand.vmem [shape: f32[1,32], index: 12, kind: input, shape index: {}]   ;;  %s1862_s13 = inlined_call_operand.vmem [shape: f32[1,32], index: 13, kind: input, shape index: {}]   ;;  %s1863_s14 = inlined_call_operand.vmem [shape: bf16[32,128], index: 14, kind: input, shape index: {}]   ;;  %s1864_s15 = inlined_call_operand.vmem [shape: f32[1,128], index: 15, kind: input, shape index: {}]   ;;  %s1865_s16 = inlined_call_operand.hbm [shape: f32[2,1,128], index: 16, kind: output, shape index: {}]  }
   0x1   :  { %1866 = sst [smem:[#allocation6_spill]] %s1849_s0 }
   0x2   :  { %1867 = sst [smem:[#allocation7_spill]] %s1850_s1 }
   0x3   :  { %1868 = sst [smem:[#allocation8_spill]] %s1851_s2 }
   0x4   :  { %1869 = sst [smem:[#allocation9_spill]] %s1852_s3 }
   0x5   :  { %1870 = sst [smem:[#allocation10_spill]] %s1853_s4 }
   0x6   :  { %21 = vsyncpa [#allocation3], 0 }
   0x7   :  { %23 = vsyncpa [#allocation3 + $0x1], 0  ;;  %s1623_s21 = smov 0   ;;  %s1625_s22 = smov 0  }
   0x8   :  { %s1627_s23 = smov 0   ;;  %s1629_s24 = smov 0  }
   0x9 LB: > { %s1644_s25 = sadd.s32 4294967295, %s1527_s24   ;;  %s1263_s26 = sadd.s32 4294967294, %s1527_s24   ;;  %s1527_s24 = sphi %s1629_s24, %s1883_s24   ;;  %s1523_s23 = sphi %s1627_s23, %s1882_s23   ;;  %s1519_s22 = sphi %s1625_s22, %s1881_s22   ;;  %s1515_s21 = sphi %s1623_s21, %s1880_s21  }
   0xa   : > { %s1648_s27 = sadd.s32 1, %s1527_s24   ;;  %s382_s28 = sadd.s32 1, %s1523_s23 }
   0xb   : > { %s379_s29 = ssub.s32 %s1527_s24, %s1648_s27  ;;  %p392_p0 = scmp.ne.s32.totalorder %s1523_s23, %s1519_s22 }
   0xc   : > { %p380_p1 = scmp.eq.s32.totalorder %s379_s29, 0  ;;  %p393_p2 = scmp.eq.s32.totalorder %s1644_s25, 1 }
   0xd   : > { %p398_p3 = scmp.ne.s32.totalorder %s1519_s22, %s1515_s21  ;;  %p399_p4 = scmp.eq.s32.totalorder %s1263_s26, 1 }
   0xe   : > { %s1659_s30 = scalar_select %p380_p1, %s1523_s23, %s382_s28  }
   0xf   : > { %p1661_p5 = por %p393_p2, %p392_p0  ;;  %p1665_p6 = por %p399_p4, %p398_p3 }
  0x10   : > { %1871 = sst [smem:[#allocation5_spill]] %s1659_s30  ;;  %p1266_p7 = scmp.ge.s32.totalorder %s1527_s24, 1 }
  0x11   : > { %p472_p8 = scmp.lt.s32.totalorder %s1527_s24, 3 }
  0x13   : > { %p473_p9 = pnand %p1266_p7, %p472_p8 }
  0x14   : > { %s1874_s2 = sld [smem:[#allocation8_spill]] (!%p473_p9)  ;;  %p523_p10 = scmp.lt.s32.totalorder (!%p473_p9), %s1644_s25, 1 }
  0x15   : > { %476 = sbr.rel (%p473_p9) target bundleno = 2633 (0xa49), region = 84  ;;  %s1875_s20 = sld [smem:[#allocation6_spill]] (!%p473_p9) }
  0x16   : > { %s1876_s3 = sld [smem:[#allocation9_spill]] (!%p473_p9)  ;;  %s1532_s18 = smov (!%p473_p9), 96  }
  0x17   : > { %s1533_s19 = smov (!%p473_p9), 80   ;;  %s1877_s1 = sld [smem:[#allocation7_spill]] (!%p473_p9) }
  0x18   : > { %s1878_s4 = sld [smem:[#allocation10_spill]] (!%p473_p9)  ;;  %s1536_s30 = smov (!%p473_p9), 16  }
  0x1a   : > { %v1441_v0 = vld [vmem:[%s1874_s2 + $0x8] sm:$0xff]   ;;  %v1529_v1 = vmov 0.0   ;;  %v1442_v2 = vld [vmem:[%s1874_s2] sm:$0xff]   ;;  %vm1530_vm0 = vmmov 0   ;;  %s1686_s28 = scalar_select %p523_p10, %s1644_s25, 1  ;;  %vm563_vm1 = vcmask 261120  }
  0x1b   : > { %1326 = vmatprep.subr.bf16.mxu0 %v1529_v1  ;;  %1334 = vmatprep.subr.bf16.mxu1 %v1529_v1  ;;  %vm611_vm2 = vcmask 130048   ;;  %vm658_vm3 = vcmask 64512   ;;  %vm676_vm4 = vcmask 1043456   ;;  %vm1050_vm5 = vcmask 523264   ;;  %s521_s2 = sand.u32 1, %s1519_s22  }
  0x1c   : > { %1327 = vmatpush3.bf16.msra.mxu0 %v1441_v0  ;;  %1330 = vmatprep.mubr.msk.bf16.mxu0 %vm1530_vm0, %v1529_v1  ;;  %s1267_s29 = sshll.u32 %s1686_s28, 2  ;;  %v1269_v4 = vld [vmem:[%s1876_s3] ss:$0 sm:$0xff] }
  0x1d   : > { %1328 = vmatprep.subr.bf16.mxu0 %v1529_v1  ;;  %1336 = vmatprep.mubr.msk.bf16.mxu1 %vm1530_vm0, %v1529_v1  ;;  %s526_s26 = scalar_lea.vmem %s1875_s20, %s1267_s29  ;;  %s1531_s29 = smov 112  }
  0x1e   : > { %v1693_v3 = vld [vmem:[%s526_s26] sm:$0xf]  ;;  %s529_s20 = scalar_lea.vmem %s1877_s1, %s1686_s28  ;;  %s1534_s28 = smov 64   ;;  %v1443_v51 = vld [vmem:[%s1878_s4 + $0x8] sm:$0xff]  }
  0x1f   : > { %v1268_v16 = vld [vmem:[%s529_s20] ss:$0 sm:$0xff]  ;;  %s1535_s26 = smov 48   ;;  %s522_s1 = scalar_lea.vmem [#allocation2], %s521_s2 }
  0x20   : > { %1329 = vmatpush3.bf16.msra.mxu0 %v1442_v2  ;;  %v1444_v52 = vld [vmem:[%s1878_s4] sm:$0xff]  }
  0x21   : > { %1340 = vmatprep.subr.bf16.mxu0 %v1529_v1  ;;  %v1277_v2 = vld [vmem:[%s1854_s5] ss:$0 sm:$0xff] }
  0x23   : > { %1331 = vmatmul.mubr.msk.bf16.vlgmr.msra.gmra.mxu0 %vm563_vm1, %v1693_v3 }
  0x24   : > { %1342 = vmatprep.mubr.msk.bf16.mxu0 %vm1530_vm0, %v1529_v1 }
  0xe3   : > { %v601_v5 = vpop.f32.mrf.mxu0 }
  0xe4   : > { %v602_v6 = vadd.f32 %v1269_v4, %v601_v5  ;;  %v532_v4 = vunpack.c.l.bf16 %v1693_v3  ;;  %v1445_v3 = vld [vmem:[%s1857_s8 + $0x8] sm:$0xff]  }
  0xe5   : > { %v1332_v7 = vpop.f32.mrf.mxu0 }
  0xe6   : > { %v607_v8 = vpack.c.bf16 %v602_v6, %v602_v6 }
  0xe7   : > { %v604_v9 = vpop.f32.mrf.mxu0 }
  0xe8   : > { %721 = vrot.lane.b32.xlu1 %v607_v8, %s1531_s29  ;;  %609 = vrot.lane.b32.xlu0 %v607_v8, %s1532_s18 }
  0xe9   : > { %v1333_v10 = vpop.f32.mrf.mxu0 }
  0xec   : > { %723 = vrot.lane.b32.xlu0 %v607_v8, %s1533_s19  ;;  %s1187_s19 = scalar_lea.sflag [#allocation3], %s521_s2 }
 0x15a   : > { %v610_v11 = vpop.permute.xlu0 %609  ;;  %v722_v15 = vpop.permute.xlu1 %721 }
 0x15b   : > { %v616_v12 = vsel %vm611_vm2, %v610_v11, 0 }
 0x15c   : > { %1335 = vmatpush3.bf16.xpose.msra.mxu1 %v616_v12 }
 0x15d   : > { %1346 = vmatprep.subr.bf16.mxu1 %v1529_v1 }
 0x15e   : > { %v724_v13 = vpop.permute.xlu0 %723 }
 0x15f   : > { %v729_v14 = vsel %vm611_vm2, %v724_v13, 0 }
 0x163   : > { %1337 = vmatmul.mubr.msk.bf16.vlgmr.msra.gmra.mxu1 %vm611_vm2, %v607_v8 }
 0x164   : > { %1347 = vmatpush3.bf16.xpose.msra.mxu1 %v729_v14  ;;  %1348 = vmatprep.mubr.msk.bf16.mxu1 %vm1530_vm0, %v1529_v1 }
 0x165   : > { %1358 = vmatprep.subr.bf16.mxu1 %v1529_v1 }
 0x16b   : > { %1349 = vmatmul.mubr.msk.bf16.vlgmr.msra.gmra.mxu1 %vm611_vm2, %v722_v15 }
 0x16c   : > { %1362 = vmatprep.mubr.msk.bf16.mxu1 %vm1530_vm0, %v1529_v1  ;;  %1359 = vmatpush3.bf16.msra.mxu1 %v1443_v51 }
 0x16d   : > { %1360 = vmatprep.subr.bf16.mxu1 %v1529_v1 }
 0x170   : > { %1361 = vmatpush3.bf16.msra.mxu1 %v1444_v52 }
 0x171   : > { %1374 = vmatprep.subr.bf16.mxu1 %v1529_v1 }
 0x223   : > { %v652_v17 = vpop.f32.mrf.mxu1 }
 0x224   : > { %v653_v18 = vadd.f32 %v1268_v16, %v652_v17  ;;  %v1446_v17 = vld [vmem:[%s1857_s8] sm:$0xff]  }
 0x225   : > { %v1338_v19 = vpop.f32.mrf.mxu1 }
 0x226   : > { %v659_v20 = vsel %vm658_vm3, %v653_v18, -inf }
 0x227   : > { %660 = vmax.xlane.f32.xlu1 %v659_v20  ;;  %v655_v21 = vpop.f32.mrf.mxu1 }
 0x229   : > { %v1339_v22 = vpop.f32.mrf.mxu1 }
 0x22a   : > { %v1281_v22 = vld [vmem:[%s1855_s6] ss:$0 sm:$0xff] }
 0x22b   : > { %v765_v23 = vpop.f32.mrf.mxu1 }
 0x22c   : > { %v766_v24 = vadd.f32 %v1268_v16, %v765_v23 }
 0x22d   : > { %v1350_v25 = vpop.f32.mrf.mxu1 }
 0x22e   : > { %v771_v26 = vsel %vm658_vm3, %v766_v24, -inf }
 0x22f   : > { %772 = vmax.xlane.f32.xlu0 %v771_v26  ;;  %v768_v27 = vpop.f32.mrf.mxu1 }
 0x231   : > { %v1351_v28 = vpop.f32.mrf.mxu1 }
 0x232   : > { %v1447_v28 = vld [vmem:[%s1859_s10 + $0x18] sm:$0xff]  }
 0x2b0   : > { %v661_v29 = vpop.xlane.xlu1 %660 }
 0x2b1   : > { %v662_v30 = vsub.f32 %v653_v18, %v661_v29  ;;  %v1448_v29 = vld [vmem:[%s1859_s10 + $0x10] sm:$0xff]  }
 0x2b3   : > { %v663_v31 = vmul.f32 1.442695, %v662_v30  ;;  %v1449_v30 = vld [vmem:[%s1859_s10 + $0x8] sm:$0xff]  }
 0x2b5   : > { %1453 = vpow2.f32 %v663_v31  ;;  %v1450_v31 = vld [vmem:[%s1859_s10] sm:$0xff]  }
 0x2b8   : > { %v773_v32 = vpop.xlane.xlu0 %772 }
 0x2b9   : > { %v774_v33 = vsub.f32 %v766_v24, %v773_v32  ;;  %v1282_v24 = vld [vmem:[%s1856_s7] ss:$0 sm:$0xff] }
 0x2ba   : > { %v1283_v32 = vld [vmem:[%s1858_s9] ss:$0 sm:$0xff] }
 0x2bb   : > { %v775_v34 = vmul.f32 1.442695, %v774_v33 }
 0x2bd   : > { %1455 = vpow2.f32 %v775_v34 }
 0x2c2   : > { %v1454_v35 = vpop.eup %1453 }
 0x2c3   : > { %v665_v36 = vsel %vm658_vm3, %v1454_v35, 0.0 }
 0x2c4   : > { %666 = vadd.xlane.f32.xlu0 %v665_v36 }
 0x2ca   : > { %v1456_v37 = vpop.eup %1455 }
 0x2cb   : > { %v777_v38 = vsel %vm658_vm3, %v1456_v37, 0.0 }
 0x2cc   : > { %778 = vadd.xlane.f32.xlu1 %v777_v38 }
 0x2da   : > { %671 = vrot.lane.b32.xlu0 %v607_v8, %s1534_s28  ;;  %s1298_s28 = sshll.u32 %s1644_s25, 4  ;;  %s1537_s25 = smov [#allocation2]  }
 0x2db   : > { %s1808_s18 = scalar_lea.hbm %s1865_s16, %s1298_s28  ;;  %s1471_s20 = sshll.u32 %s1537_s25, 4  ;;  %s1472_s20 = int_to_ptr.vmem [resolvable:$false] %s1471_s20 }
 0x2dc   : > { %s1473_s3 = scalar_lea.vmem %s1472_s20, 32 }
 0x2dd   : > { %783 = vrot.lane.b32.xlu1 %v607_v8, %s1535_s26  ;;  %s1199_s26 = sshll.u32 %s522_s1, 4  ;;  %s1810_s26 = int_to_ptr.vmem [resolvable:$true] %s1199_s26 }
 0x2de   : > { %p1474_p0 = scmp.lt.s32.totalorder %s1810_s26, %s1472_s20 }
 0x34d   : > { %v667_v39 = vpop.xlane.xlu0 %666 }
 0x34e   : > { %1457 = vrcp.f32 %v667_v39 }
 0x351   : > { %v672_v40 = vpop.permute.xlu0 %671 }
 0x352   : > { %v678_v41 = vsel %vm676_vm4, %v672_v40, 0 }
 0x353   : > { %1341 = vmatpush3.bf16.msra.mxu0 %v678_v41 }
 0x354   : > { %1352 = vmatprep.subr.bf16.mxu0 %v1529_v1 }
 0x355   : > { %v779_v42 = vpop.xlane.xlu1 %778 }
 0x356   : > { %1459 = vrcp.f32 %v779_v42 }
 0x359   : > { %v784_v45 = vpop.permute.xlu1 %783 }
 0x35a   : > { %v789_v47 = vsel %vm676_vm4, %v784_v45, 0 }
 0x35b   : > { %v1458_v43 = vpop.eup %1457 }
 0x35c   : > { %v669_v44 = vmul.f32 %v1458_v43, %v1454_v35 }
 0x35e   : > { %v670_v46 = vpack.c.bf16 %v669_v44, %v669_v44 }
 0x360   : > { %1343 = vmatmul.mubr.msk.bf16.vlgmr.msra.gmra.mxu0 %vm658_vm3, %v670_v46 }
 0x361   : > { %1353 = vmatpush3.bf16.msra.mxu0 %v789_v47  ;;  %1354 = vmatprep.mubr.msk.bf16.mxu0 %vm1530_vm0, %v1529_v1 }
 0x362   : > { %1366 = vmatprep.subr.bf16.mxu0 %v1529_v1 }
 0x363   : > { %v1460_v48 = vpop.eup %1459 }
 0x364   : > { %v781_v49 = vmul.f32 %v1460_v48, %v1456_v37  ;;  %v1287_v48 = vld [vmem:[%s1860_s11] ss:$0 sm:$0xff] }
 0x366   : > { %v782_v50 = vpack.c.bf16 %v781_v49, %v781_v49 }
 0x368   : > { %1355 = vmatmul.mubr.msk.bf16.vlgmr.msra.gmra.mxu0 %vm658_vm3, %v782_v50 }
 0x369   : > { %1370 = vmatprep.mubr.msk.bf16.mxu0 %vm1530_vm0, %v1529_v1  ;;  %1367 = vmatpush3.bf16.msra.mxu0 %v1445_v3 }
 0x36a   : > { %1368 = vmatprep.subr.bf16.mxu0 %v1529_v1 }
 0x36d   : > { %1369 = vmatpush3.bf16.msra.mxu0 %v1446_v17 }
 0x36e   : > { %1386 = vmatprep.subr.bf16.mxu0 %v1529_v1 }
 0x420   : > { %v714_v53 = vpop.f32.mrf.mxu0 }
 0x421   : > { %v720_v62 = vpack.c.bf16 %v714_v53, %v714_v53 }
 0x422   : > { %v1344_v54 = vpop.f32.mrf.mxu0 }
 0x424   : > { %v717_v55 = vpop.f32.mrf.mxu0 }
 0x426   : > { %v1345_v56 = vpop.f32.mrf.mxu0 }
 0x428   : > { %v825_v57 = vpop.f32.mrf.mxu0 }
 0x429   : > { %v831_v58 = vpack.c.bf16 %v825_v57, %v825_v57 }
 0x42a   : > { %v1356_v59 = vpop.f32.mrf.mxu0 }
 0x42b   : > { %833 = vrot.lane.b32.xlu1 %v831_v58, %s1536_s30  ;;  %s1467_s30 = scalar_lea.vmem %s1810_s26, 16 }
 0x42c   : > { %v828_v60 = vpop.f32.mrf.mxu0  ;;  %p1468_p11 = scmp.ne.s32.totalorder %s1810_s26, %s1467_s30  ;;  %p1475_p1 = scmp.lt.s32.totalorder %s1473_s3, %s1467_s30 }
 0x42e   : > { %v1357_v61 = vpop.f32.mrf.mxu0  ;;  %p1469_p12 = pnand %p1468_p11, %p1661_p5  ;;  %p1476_p2 = por %p1475_p1, %p1474_p0 }
 0x42f   : > { %v1451_v61 = vld [vmem:[%s1863_s14 + $0x8] sm:$0xff]  }
 0x430   : > { %p1470_p13 = pneg %p1469_p12 }
 0x432   : > { %p1477_p3 = pnand %p1476_p2, %p1470_p13 }
 0x49d   : > { %v834_v63 = vpop.permute.xlu1 %833 }
 0x49e   : > { %v837_v0 = vsel %vm611_vm2, %v720_v62, %v834_v63  ;;  %v1452_v62 = vld [vmem:[%s1863_s14] sm:$0xff]  }
 0x49f   : > { %1363 = vmatmul.mubr.msk.bf16.vlgmr.msra.gmra.mxu1 %vm563_vm1, %v837_v0 }
 0x4a0   : > { %1382 = vmatprep.mubr.msk.bf16.mxu1 %vm1530_vm0, %v1529_v1  ;;  %1375 = vmatpush3.bf16.msra.mxu1 %v1447_v28 }
 0x4a1   : > { %1376 = vmatprep.subr.bf16.mxu1 %v1529_v1 }
 0x4a4   : > { %1377 = vmatpush3.bf16.msra.mxu1 %v1448_v29 }
 0x4a5   : > { %1378 = vmatprep.subr.bf16.mxu1 %v1529_v1 }
 0x4a8   : > { %1379 = vmatpush3.bf16.msra.mxu1 %v1449_v30 }
 0x4a9   : > { %1380 = vmatprep.subr.bf16.mxu1 %v1529_v1 }
 0x4ac   : > { %1381 = vmatpush3.bf16.msra.mxu1 %v1450_v31 }
 0x55f   : > { %v897_v5 = vpop.f32.mrf.mxu1 }
 0x560   : > { %v898_v6 = vadd.f32 %v1277_v2, %v897_v5  ;;  %v1293_v5 = vld [vmem:[%s1861_s12] ss:$0 sm:$0xff] }
 0x561   : > { %v1364_v7 = vpop.f32.mrf.mxu1 }
 0x562   : > { %v903_v8 = vadd.f32 %v898_v6, %v532_v4  ;;  %v1294_v7 = vld [vmem:[%s1862_s13] ss:$0 sm:$0xff] }
 0x563   : > { %v900_v9 = vpop.f32.mrf.mxu1 }
 0x564   : > { %v906_v10 = vsel %vm563_vm1, %v903_v8, 0.0 }
 0x565   : > { %v1365_v11 = vpop.f32.mrf.mxu1  ;;  %907 = vadd.xlane.f32.xlu0 %v906_v10 }
 0x5ee   : > { %v908_v12 = vpop.xlane.xlu0 %907 }
 0x5ef   : > { %v910_v13 = vmul.f32 0.03125, %v908_v12 }
 0x5f1   : > { %v911_v14 = vsub.f32 %v903_v8, %v910_v13 }
 0x5f3   : > { %v912_v15 = vmul.f32 %v911_v14, %v911_v14 }
 0x5f5   : > { %v913_v16 = vsel %vm563_vm1, %v912_v15, 0.0 }
 0x5f6   : > { %914 = vadd.xlane.f32.xlu1 %v913_v16 }
 0x67f   : > { %v915_v18 = vpop.xlane.xlu1 %914 }
 0x680   : > { %v916_v19 = vmul.f32 0.03125, %v915_v18 }
 0x682   : > { %v917_v20 = vadd.f32 1e-12, %v916_v19 }
 0x684   : > { %1461 = vrsqrt.f32 %v917_v20 }
 0x691   : > { %v1462_v21 = vpop.eup %1461 }
 0x692   : > { %v919_v23 = vmul.f32 %v1462_v21, %v911_v14 }
 0x694   : > { %v926_v25 = vmul.f32 %v1281_v22, %v919_v23 }
 0x696   : > { %v933_v26 = vadd.f32 %v1282_v24, %v926_v25 }
 0x698   : > { %v934_v27 = vpack.c.bf16 %v933_v26, %v933_v26 }
 0x69a   : > { %1371 = vmatmul.mubr.msk.bf16.vlgmr.msra.gmra.mxu0 %vm563_vm1, %v934_v27 }
 0x69b   : > { %1390 = vmatprep.mubr.msk.bf16.mxu0 %vm1530_vm0, %v1529_v1  ;;  %1387 = vmatpush3.bf16.msra.mxu0 %v1451_v61 }
 0x69c   : > { %1388 = vmatprep.subr.bf16.mxu0 %v1529_v1  ;;  %v1129_v1 = vld [vmem:[%s1864_s15] sm:$0x1] }
 0x69f   : > { %1389 = vmatpush3.bf16.msra.mxu0 %v1452_v62 }
 0x75a   : > { %v995_v33 = vpop.f32.mrf.mxu0 }
 0x75b   : > { %v996_v34 = vadd.f32 %v1283_v32, %v995_v33 }
 0x75c   : > { %v1372_v35 = vpop.f32.mrf.mxu0 }
 0x75d   : > { %v1001_v36 = vmul.f32 %v996_v34, %v996_v34 }
 0x75e   : > { %v998_v37 = vpop.f32.mrf.mxu0 }
 0x75f   : > { %v1002_v38 = vmul.f32 %v1001_v36, %v996_v34 }
 0x760   : > { %v1373_v39 = vpop.f32.mrf.mxu0 }
 0x761   : > { %v1003_v40 = vmul.f32 0.044715, %v1002_v38 }
 0x763   : > { %v1004_v41 = vadd.f32 %v1003_v40, %v996_v34 }
 0x765   : > { %v1005_v42 = vmul.f32 0.7978846, %v1004_v41 }
 0x767   : > { %1463 = vtanh.f32 %v1005_v42 }
 0x774   : > { %v1464_v43 = vpop.eup %1463 }
 0x775   : > { %v1007_v44 = vadd.f32 1.0, %v1464_v43 }
 0x777   : > { %v1008_v45 = vmul.f32 0.5, %v1007_v44 }
 0x779   : > { %v1009_v46 = vmul.f32 %v1008_v45, %v996_v34 }
 0x77b   : > { %v1010_v47 = vpack.c.bf16 %v1009_v46, %v1009_v46 }
 0x77d   : > { %1383 = vmatmul.mubr.msk.bf16.vlgmr.msra.gmra.mxu1 %vm1050_vm5, %v1010_v47 }
 0x83d   : > { %v1088_v49 = vpop.f32.mrf.mxu1 }
 0x83e   : > { %v1089_v50 = vadd.f32 %v1287_v48, %v1088_v49 }
 0x83f   : > { %v1384_v51 = vpop.f32.mrf.mxu1 }
 0x840   : > { %v1094_v52 = vadd.f32 %v1089_v50, %v933_v26 }
 0x841   : > { %v1091_v53 = vpop.f32.mrf.mxu1 }
 0x842   : > { %v1097_v54 = vsel %vm563_vm1, %v1094_v52, 0.0 }
 0x843   : > { %1098 = vadd.xlane.f32.xlu0 %v1097_v54  ;;  %v1385_v55 = vpop.f32.mrf.mxu1 }
 0x8cc   : > { %v1099_v56 = vpop.xlane.xlu0 %1098 }
 0x8cd   : > { %v1100_v57 = vmul.f32 0.03125, %v1099_v56 }
 0x8cf   : > { %v1101_v58 = vsub.f32 %v1094_v52, %v1100_v57 }
 0x8d1   : > { %v1102_v59 = vmul.f32 %v1101_v58, %v1101_v58 }
 0x8d3   : > { %v1103_v60 = vsel %vm563_vm1, %v1102_v59, 0.0 }
 0x8d4   : > { %1104 = vadd.xlane.f32.xlu0 %v1103_v60 }
 0x95d   : > { %v1105_v63 = vpop.xlane.xlu0 %1104 }
 0x95e   : > { %v1106_v0 = vmul.f32 0.03125, %v1105_v63 }
 0x960   : > { %v1107_v2 = vadd.f32 1e-12, %v1106_v0 }
 0x962   : > { %1465 = vrsqrt.f32 %v1107_v2 }
 0x96f   : > { %v1466_v4 = vpop.eup %1465 }
 0x970   : > { %v1109_v6 = vmul.f32 %v1466_v4, %v1101_v58 }
 0x972   : > { %v1116_v8 = vmul.f32 %v1293_v5, %v1109_v6 }
 0x974   : > { %v1123_v9 = vadd.f32 %v1294_v7, %v1116_v8 }
 0x976   : > { %v1124_v10 = vpack.c.bf16 %v1123_v9, %v1123_v9 }
 0x978   : > { %1391 = vmatmul.mubr.msk.bf16.vlgmr.msra.gmra.mxu0 %vm563_vm1, %v1124_v10 }
 0xa38   : > { %v1179_v11 = vpop.f32.mrf.mxu0 }
 0xa39   : > { %v1180_v12 = vadd.f32 %v1179_v11, %v1129_v1 }
 0xa3a   : > { %v1392_v13 = vpop.f32.mrf.mxu0 }
 0xa3b   : > { %1185 = vst [vmem:[%s522_s1] sm:$0x1] %v1180_v12 }
 0xa3c   : > { %v1182_v14 = vpop.f32.mrf.mxu0 }
 0xa3d   : > { %1480 = shalt.err (!%p1477_p3)
}
 0xa3e   : > { %s1481_s1 = scalar_lea.hbm %s1808_s18, 16  ;;  %s1485_s29 = scalar_lea.hbm %s1865_s16, 32 }
 0xa3f   : > { %p1482_p4 = scmp.ne.s32.totalorder %s1808_s18, %s1481_s1  ;;  %p1486_p9 = scmp.lt.s32.totalorder %s1808_s18, %s1865_s16 }
 0xa40   : > { %p1487_p10 = scmp.lt.s32.totalorder %s1485_s29, %s1481_s1 }
 0xa41   : > { %p1483_p7 = pnand %p1482_p4, %p1661_p5 }
 0xa42   : > { %p1488_p11 = por %p1487_p10, %p1486_p9 }
 0xa43   : > { %p1484_p8 = pneg %p1483_p7 }
 0xa45   : > { %p1489_p12 = pnand %p1488_p11, %p1484_p8 }
 0xa47   : > { %1492 = shalt.err (!%p1489_p12)
}
 0xa48   : > { %1394 = dma.vmem_to_hbm [thread:$0]  (%p1661_p5), %s1810_s26, 16, %s1808_s18, %s1187_s19   ;;  %v1393_v15 = vpop.f32.mrf.mxu0 }
 0xa49 PF: > { %p1400_p13 = scmp.ge.s32.totalorder %s1527_s24, 2  ;;  %s1211_s30 = sand.u32 1, %s1515_s21  }
 0xa4a   : > { %s1212_s4 = scalar_lea.sflag [#allocation3], %s1211_s30 }
 0xa4b   : > { %p1397_p0 = pnand %p1400_p13, %p1665_p6 }
 0xa4d   : > { %p1398_p1 = pneg %p1397_p0 }
 0xa4f   : > { %1510 = dma.done.wait (%p1398_p1), %s1212_s4, 16  }
 0xa50   : > { %1512 = vsyncadd (%p1398_p1), %s1212_s4, 4294967280  ;;  %s1879_s0 = sld [smem:[#allocation5_spill]]  ;;  %p26_p2 = scmp.ge.s32.totalorder %s1648_s27, 4  }
 0xa51   : > { %s1880_s21 = smov %s1519_s22  ;;  %s1881_s22 = smov %s1523_s23 }
 0xa52   : > { %s1883_s24 = smov %s1648_s27  ;;  %28 = sbr.rel (!%p26_p2) target bundleno = 9 (0x9), region = 122 }
 0xa56   : > { %s1882_s23 = smov %s1879_s0 }
 0xa57   :  { %1216 = vsyncpa [#allocation3], 1 }
 0xa58   :  { %1218 = vsyncpa [#allocation3 + $0x1], 1 }

</bundles_post_ra>
